<compile_context>
chip_gen: v5e
topology: v5e:2x2
jax: 0.10.0
libtpu: 0.0.40
codegen_flags: <defaults>
</compile_context>

<pallas_src>
import jax
import jax.numpy as jnp
from jax import lax
from jax.experimental import pallas as pl
from jax.experimental.pallas import tpu as pltpu

_BF16 = jnp.bfloat16
_VMEM_LIMIT = 32 * 1024 * 1024


# ---------------------------------------------------------------------------
# Helpers
# ---------------------------------------------------------------------------
def _fold_bn(w, gamma, beta, mean, var, eps):
    """Fold BatchNorm(eval) into the conv weights: y = (x * w_folded) + shift."""
    scale = gamma * lax.rsqrt(var + eps)                 # (Cout,)
    w_folded = (w * scale).astype(_BF16)                 # scale folded into weights
    shift = (beta - mean * scale).astype(jnp.float32)    # f32 epilogue bias
    return w_folded, shift


def _pick_tile_h(H, target):
    """Largest even divisor of H that is <= target (falls back to H)."""
    th = max(2, min(target, H))
    while th > 2 and (H % th != 0 or th % 2 != 0):
        th -= 1
    if H % th != 0 or th % 2 != 0:
        th = H
    return th


# ---------------------------------------------------------------------------
# 3x3 conv (stride 1, SAME) + folded-BN shift + LeakyReLU(0.1)
# optional fused 2x2/2 average pool (second output)
# ---------------------------------------------------------------------------
def _make_conv3x3_kernel(H, W, Cin, Cout, th, fuse_pool):
    KH = KW = 3
    M = th * W

    def kernel(x_ref, w_ref, shift_ref, *refs):
        if fuse_pool:
            o_ref, p_ref, pad_ref, rs_ref = refs
        else:
            o_ref, pad_ref = refs
        h = pl.program_id(1)

        # Build the zero-padded image in VMEM once per batch element (h == 0).
        # This replaces a wrapper-side jnp.pad (a full HBM read+write per conv).
        @pl.when(h == 0)
        def _():
            pad_ref[...] = jnp.zeros_like(pad_ref)
            pad_ref[1:H + 1, 1:W + 1, :] = x_ref[0]

        r0 = pl.multiple_of(h * th, th)

        # im2col: 9 static-offset reads from the padded scratch, one K=9*Cin dot.
        cols = []
        for kh in range(KH):
            for kw in range(KW):
                tap = pad_ref[pl.ds(r0 + kh, th), pl.ds(kw, W), :]   # (th, W, Cin)
                cols.append(tap.reshape(M, Cin))
        patch = jnp.concatenate(cols, axis=-1)                       # (M, 9*Cin) bf16

        acc = jnp.dot(patch, w_ref[...], preferred_element_type=jnp.float32)
        y = acc + shift_ref[...]                                     # BN scale already in w
        y = jnp.where(y > 0, y, 0.1 * y)                             # LeakyReLU(0.1) in f32
        o_ref[...] = y.reshape(1, th, W, Cout).astype(o_ref.dtype)

        if fuse_pool:
            # Fused 2x2 average pool of this tile: VPU adds + strided VMEM reads
            # (no MXU, no per-row grid steps).
            for i in range(th // 2):
                rs_ref[i] = (o_ref[0, 2 * i].astype(jnp.float32)
                             + o_ref[0, 2 * i + 1].astype(jnp.float32))
            p = 0.25 * (rs_ref[:, pl.ds(0, W // 2, 2), :]
                        + rs_ref[:, pl.ds(1, W // 2, 2), :])
            p_ref[...] = p[None].astype(p_ref.dtype)

    return kernel


def conv3x3_bn_lrelu(x, p, *, eps=1e-5, h_tile=8, fuse_pool=False):
    """x: (N, H, W, Cin) NHWC. Returns NHWC bf16 (and pooled output if fused)."""
    N, H, W, Cin = x.shape
    KH, KW, _, Cout = p["w"].shape
    assert (KH, KW) == (3, 3)

    w_f, shift = _fold_bn(p["w"], p["gamma"], p["beta"], p["mean"], p["var"], eps)
    w_f = w_f.reshape(KH * KW * Cin, Cout)
    shift = shift.reshape(1, Cout)

    th = _pick_tile_h(H, h_tile)
    if fuse_pool:
        assert H % 2 == 0 and W % 2 == 0 and th % 2 == 0
    grid = (N, H // th)

    kernel = _make_conv3x3_kernel(H, W, Cin, Cout, th, fuse_pool)

    if fuse_pool:
        out_shape = (jax.ShapeDtypeStruct((N, H, W, Cout), _BF16),
                     jax.ShapeDtypeStruct((N, H // 2, W // 2, Cout), _BF16))
        out_specs = (pl.BlockSpec((1, th, W, Cout), lambda n, h: (n, h, 0, 0)),
                     pl.BlockSpec((1, th // 2, W // 2, Cout),
                                  lambda n, h: (n, h, 0, 0)))
        scratch = [pltpu.VMEM((H + 2, W + 2, Cin), _BF16),
                   pltpu.VMEM((th // 2, W, Cout), jnp.float32)]
    else:
        out_shape = jax.ShapeDtypeStruct((N, H, W, Cout), _BF16)
        out_specs = pl.BlockSpec((1, th, W, Cout), lambda n, h: (n, h, 0, 0))
        scratch = [pltpu.VMEM((H + 2, W + 2, Cin), _BF16)]

    return pl.pallas_call(
        kernel,
        out_shape=out_shape,
        grid=grid,
        in_specs=[
            pl.BlockSpec((1, H, W, Cin), lambda n, h: (n, 0, 0, 0)),
            pl.BlockSpec((KH * KW * Cin, Cout), lambda n, h: (0, 0)),
            pl.BlockSpec((1, Cout), lambda n, h: (0, 0)),
        ],
        out_specs=out_specs,
        scratch_shapes=scratch,
        compiler_params=pltpu.CompilerParams(
            # h axis is 'arbitrary': the padded-image scratch is filled at h==0
            # and reused sequentially for the remaining h tiles of the same n.
            dimension_semantics=("parallel", "arbitrary"),
            vmem_limit_bytes=_VMEM_LIMIT),
    )(x.astype(_BF16), w_f, shift)


# ---------------------------------------------------------------------------
# 1x1 conv over the (implicit) channel concat of two inputs + folded-BN shift
# + LeakyReLU(0.1) + fused 2x2 average pool.  Replaces
# avgpool(conv4(cat([x3, route1]))) without materializing the concat in HBM.
# ---------------------------------------------------------------------------
def _make_conv1x1_pool_kernel(th, W, C2, Cout):
    M = th * W

    def kernel(a_ref, b_ref, w_ref, shift_ref, p_ref, full_ref, rs_ref):
        a = a_ref[0].reshape(M, C2)                    # conv3 output tile
        b = b_ref[0].reshape(M, C2)                    # route1 tile
        x = jnp.concatenate([a, b], axis=-1)           # in-register channel concat
        acc = jnp.dot(x, w_ref[...], preferred_element_type=jnp.float32)
        y = acc + shift_ref[...]
        y = jnp.where(y > 0, y, 0.1 * y)               # LeakyReLU(0.1) in f32
        full_ref[...] = y.reshape(th, W, Cout).astype(full_ref.dtype)

        # fused 2x2 average pool (VPU adds + strided VMEM reads)
        for i in range(th // 2):
            rs_ref[i] = (full_ref[2 * i].astype(jnp.float32)
                         + full_ref[2 * i + 1].astype(jnp.float32))
        p = 0.25 * (rs_ref[:, pl.ds(0, W // 2, 2), :]
                    + rs_ref[:, pl.ds(1, W // 2, 2), :])
        p_ref[...] = p[None].astype(p_ref.dtype)

    return kernel


def conv1x1_bn_lrelu_pool(x3, r1, p, *, eps=1e-5, h_tile=8):
    N, H, W, C2 = x3.shape
    Cout = p["w"].shape[-1]
    assert p["w"].shape[:3] == (1, 1, 2 * C2)
    assert H % 2 == 0 and W % 2 == 0

    w_f, shift = _fold_bn(p["w"], p["gamma"], p["beta"], p["mean"], p["var"], eps)
    w_f = w_f.reshape(2 * C2, Cout)
    shift = shift.reshape(1, Cout)

    th = _pick_tile_h(H, h_tile)
    grid = (N, H // th)
    kernel = _make_conv1x1_pool_kernel(th, W, C2, Cout)

    return pl.pallas_call(
        kernel,
        out_shape=jax.ShapeDtypeStruct((N, H // 2, W // 2, Cout), _BF16),
        grid=grid,
        in_specs=[
            pl.BlockSpec((1, th, W, C2), lambda n, h: (n, h, 0, 0)),
            pl.BlockSpec((1, th, W, C2), lambda n, h: (n, h, 0, 0)),
            pl.BlockSpec((2 * C2, Cout), lambda n, h: (0, 0)),
            pl.BlockSpec((1, Cout), lambda n, h: (0, 0)),
        ],
        out_specs=pl.BlockSpec((1, th // 2, W // 2, Cout),
                               lambda n, h: (n, h, 0, 0)),
        scratch_shapes=[pltpu.VMEM((th, W, Cout), _BF16),
                        pltpu.VMEM((th // 2, W, Cout), jnp.float32)],
        compiler_params=pltpu.CompilerParams(
            dimension_semantics=("parallel", "parallel"),
            vmem_limit_bytes=_VMEM_LIMIT),
    )(x3.astype(_BF16), r1.astype(_BF16), w_f, shift)


# ---------------------------------------------------------------------------
# Parameter init (deterministic, synthetic) and ResBlock forward
# ---------------------------------------------------------------------------
def init_basic_conv(key, cin, cout, k):
    kw, kg, kb, km, kv = jax.random.split(key, 5)
    w = jax.random.normal(kw, (k, k, cin, cout), jnp.float32)
    w = w * (1.0 / (k * k * cin)) ** 0.5
    gamma = jax.random.uniform(kg, (cout,), jnp.float32, 0.5, 1.5)
    beta = 0.1 * jax.random.normal(kb, (cout,), jnp.float32)
    mean = 0.1 * jax.random.normal(km, (cout,), jnp.float32)
    var = jax.random.uniform(kv, (cout,), jnp.float32, 0.5, 1.5)
    return dict(w=w, gamma=gamma, beta=beta, mean=mean, var=var)


def resblock_init(key, in_channels, out_channels):
    k1, k2, k3, k4 = jax.random.split(key, 4)
    return dict(
        conv1=init_basic_conv(k1, in_channels, out_channels, 3),
        conv2=init_basic_conv(k2, out_channels, out_channels // 2, 3),
        conv3=init_basic_conv(k3, out_channels // 2, out_channels // 2, 3),
        conv4=init_basic_conv(k4, out_channels, out_channels, 1),
    )


def resblock_forward(params, x_nchw, *, h_tile=8):
    x = jnp.transpose(x_nchw, (0, 2, 3, 1)).astype(_BF16)      # NCHW -> NHWC bf16
    # conv1: full-res 'route' plus its pooled version (fused in one kernel)
    route, route_pooled = conv3x3_bn_lrelu(x, params["conv1"],
                                           h_tile=h_tile, fuse_pool=True)
    r1 = conv3x3_bn_lrelu(route, params["conv2"], h_tile=h_tile)   # route1
    x3 = conv3x3_bn_lrelu(r1, params["conv3"], h_tile=h_tile)
    # conv4 (1x1) on cat([x3, route1]) + avgpool, all fused (no HBM concat)
    y4_pooled = conv1x1_bn_lrelu_pool(x3, r1, params["conv4"], h_tile=h_tile)
    # avgpool(cat([route, conv4])) == cat([avgpool(route), avgpool(conv4)])
    out = jnp.concatenate([route_pooled, y4_pooled], axis=-1)  # small (pooled) concat
    return jnp.transpose(out, (0, 3, 1, 2)).astype(jnp.float32)  # NHWC -> NCHW


# ---------------------------------------------------------------------------
# Pure-JAX reference (mirrors the bf16 rounding points of the kernel path)
# ---------------------------------------------------------------------------
def _ref_basic_conv(p, x_bf, eps=1e-5):
    scale = p["gamma"] * lax.rsqrt(p["var"] + eps)
    w_f = (p["w"] * scale).astype(_BF16).astype(jnp.float32)
    y = lax.conv_general_dilated(x_bf.astype(jnp.float32), w_f, (1, 1), "SAME",
                                 dimension_numbers=("NHWC", "HWIO", "NHWC"))
    y = y + (p["beta"] - p["mean"] * scale)
    y = jnp.where(y > 0, y, 0.1 * y)
    return y.astype(_BF16)


def _ref_pool2x2(v):
    v = v.astype(jnp.float32)
    return (0.25 * ((v[:, 0::2, 0::2, :] + v[:, 1::2, 0::2, :])
                    + (v[:, 0::2, 1::2, :] + v[:, 1::2, 1::2, :]))).astype(_BF16)


def _ref_resblock(params, x_nchw, eps=1e-5):
    x = jnp.transpose(x_nchw, (0, 2, 3, 1)).astype(_BF16)
    route = _ref_basic_conv(params["conv1"], x, eps)
    r1 = _ref_basic_conv(params["conv2"], route, eps)
    x3 = _ref_basic_conv(params["conv3"], r1, eps)
    cat = jnp.concatenate([x3, r1], axis=-1)
    y4 = _ref_basic_conv(params["conv4"], cat, eps)
    out = jnp.concatenate([_ref_pool2x2(route), _ref_pool2x2(y4)], axis=-1)
    return jnp.transpose(out, (0, 3, 1, 2)).astype(jnp.float32)


if __name__ == "__main__":
    key = jax.random.PRNGKey(0)
    kx, kp = jax.random.split(key)

    N, Cin, Cout, H, W = 2, 4, 8, 16, 16
    x = jax.random.normal(kx, (N, Cin, H, W), jnp.float32)   # NCHW like PyTorch
    params = resblock_init(kp, Cin, Cout)

    out = jax.block_until_ready(resblock_forward(params, x))
    assert out.shape == (N, 2 * Cout, H // 2, W // 2), out.shape

    ref = _ref_resblock(params, x)
    max_err = float(jnp.max(jnp.abs(out - ref)))
    assert jnp.allclose(out, ref, atol=2e-2, rtol=2e-2), max_err

    print("KERNEL_OK")
</pallas_src>

<mosaic_0001>
module attributes {stable_mosaic.version = 11 : i64} {
  func.func @kernel(%arg0: i32, %arg1: i32, %arg2: memref<1x16x16x4xbf16, #tpu.memory_space<vmem>>, %arg3: memref<36x8xbf16, #tpu.memory_space<vmem>>, %arg4: memref<1x8xf32, #tpu.memory_space<vmem>>, %arg5: memref<1x8x16x8xbf16, #tpu.memory_space<vmem>>, %arg6: memref<1x4x8x8xbf16, #tpu.memory_space<vmem>>, %arg7: memref<18x18x4xbf16, #tpu.memory_space<vmem>>, %arg8: memref<4x16x8xf32, #tpu.memory_space<vmem>>) attributes {dimension_semantics = [#tpu.dimension_semantics<parallel>, #tpu.dimension_semantics<arbitrary>], iteration_bounds = array<i64: 2, 2>, scalar_prefetch = 0 : i64, scratch_operands = 2 : i64, tpu.core_type = #tpu.core_type<tc>, window_params = [{transform_indices = @transform_0, window_bounds = array<i64: 1, 16, 16, 4>}, {pipeline_mode = #tpu.pipeline_mode<synchronous>, transform_indices = @transform_1, window_bounds = array<i64: 36, 8>}, {pipeline_mode = #tpu.pipeline_mode<synchronous>, transform_indices = @transform_2, window_bounds = array<i64: 1, 8>}, {transform_indices = @transform_3, window_bounds = array<i64: 1, 8, 16, 8>}, {transform_indices = @transform_4, window_bounds = array<i64: 1, 4, 8, 8>}]} {
    %c0_i32 = arith.constant 0 : i32
    %0 = arith.cmpi eq, %arg1, %c0_i32 : i32
    %1 = arith.extui %0 : i1 to i32
    %c0_i32_0 = arith.constant 0 : i32
    %2 = arith.cmpi ne, %1, %c0_i32_0 : i32
    scf.if %2 {
      %cst_83 = arith.constant 0.000000e+00 : bf16
      %103 = vector.broadcast %cst_83 : bf16 to vector<18x18x4xbf16>
      %c0_84 = arith.constant 0 : index
      %c0_85 = arith.constant 0 : index
      %c0_86 = arith.constant 0 : index
      %104 = vector.load %arg7[%c0_84, %c0_85, %c0_86] : memref<18x18x4xbf16, #tpu.memory_space<vmem>>, vector<18x18x4xbf16>
      tpu.vector_store %arg7[%c0_84, %c0_85, %c0_86], %103 {strides = array<i32>} : memref<18x18x4xbf16, #tpu.memory_space<vmem>>, vector<18x18x4xbf16>,
      %c0_87 = arith.constant 0 : index
      %c0_88 = arith.constant 0 : index
      %c0_89 = arith.constant 0 : index
      %c0_90 = arith.constant 0 : index
      %105 = vector.load %arg2[%c0_87, %c0_88, %c0_89, %c0_90] : memref<1x16x16x4xbf16, #tpu.memory_space<vmem>>, vector<1x16x16x4xbf16>
      %106 = vector.shape_cast %105 : vector<1x16x16x4xbf16> to vector<16x16x4xbf16>
      %c1_91 = arith.constant 1 : index
      %c1_92 = arith.constant 1 : index
      %c0_93 = arith.constant 0 : index
      %107 = vector.load %arg7[%c1_91, %c1_92, %c0_93] : memref<18x18x4xbf16, #tpu.memory_space<vmem>>, vector<16x16x4xbf16>
      tpu.vector_store %arg7[%c1_91, %c1_92, %c0_93], %106 {strides = array<i32>} : memref<18x18x4xbf16, #tpu.memory_space<vmem>>, vector<16x16x4xbf16>,
    } else {
    }
    %c8_i32 = arith.constant 8 : i32
    %3 = arith.muli %arg1, %c8_i32 : i32
    %4 = tpu.assume_multiple %3, 8 : i32
    %c0_i32_1 = arith.constant 0 : i32
    %5 = arith.addi %4, %c0_i32_1 : i32
    %6 = arith.index_cast %5 : i32 to index
    %c0 = arith.constant 0 : index
    %c0_2 = arith.constant 0 : index
    %7 = vector.load %arg7[%6, %c0, %c0_2] : memref<18x18x4xbf16, #tpu.memory_space<vmem>>, vector<8x16x4xbf16>
    %8 = vector.shape_cast %7 : vector<8x16x4xbf16> to vector<128x4xbf16>
    %c0_i32_3 = arith.constant 0 : i32
    %9 = arith.addi %4, %c0_i32_3 : i32
    %10 = arith.index_cast %9 : i32 to index
    %c1 = arith.constant 1 : index
    %c0_4 = arith.constant 0 : index
    %11 = vector.load %arg7[%10, %c1, %c0_4] : memref<18x18x4xbf16, #tpu.memory_space<vmem>>, vector<8x16x4xbf16>
    %12 = vector.shape_cast %11 : vector<8x16x4xbf16> to vector<128x4xbf16>
    %c0_i32_5 = arith.constant 0 : i32
    %13 = arith.addi %4, %c0_i32_5 : i32
    %14 = arith.index_cast %13 : i32 to index
    %c2 = arith.constant 2 : index
    %c0_6 = arith.constant 0 : index
    %15 = vector.load %arg7[%14, %c2, %c0_6] : memref<18x18x4xbf16, #tpu.memory_space<vmem>>, vector<8x16x4xbf16>
    %16 = vector.shape_cast %15 : vector<8x16x4xbf16> to vector<128x4xbf16>
    %c1_i32 = arith.constant 1 : i32
    %17 = arith.addi %4, %c1_i32 : i32
    %18 = arith.index_cast %17 : i32 to index
    %c0_7 = arith.constant 0 : index
    %c0_8 = arith.constant 0 : index
    %19 = vector.load %arg7[%18, %c0_7, %c0_8] : memref<18x18x4xbf16, #tpu.memory_space<vmem>>, vector<8x16x4xbf16>
    %20 = vector.shape_cast %19 : vector<8x16x4xbf16> to vector<128x4xbf16>
    %c1_i32_9 = arith.constant 1 : i32
    %21 = arith.addi %4, %c1_i32_9 : i32
    %22 = arith.index_cast %21 : i32 to index
    %c1_10 = arith.constant 1 : index
    %c0_11 = arith.constant 0 : index
    %23 = vector.load %arg7[%22, %c1_10, %c0_11] : memref<18x18x4xbf16, #tpu.memory_space<vmem>>, vector<8x16x4xbf16>
    %24 = vector.shape_cast %23 : vector<8x16x4xbf16> to vector<128x4xbf16>
    %c1_i32_12 = arith.constant 1 : i32
    %25 = arith.addi %4, %c1_i32_12 : i32
    %26 = arith.index_cast %25 : i32 to index
    %c2_13 = arith.constant 2 : index
    %c0_14 = arith.constant 0 : index
    %27 = vector.load %arg7[%26, %c2_13, %c0_14] : memref<18x18x4xbf16, #tpu.memory_space<vmem>>, vector<8x16x4xbf16>
    %28 = vector.shape_cast %27 : vector<8x16x4xbf16> to vector<128x4xbf16>
    %c2_i32 = arith.constant 2 : i32
    %29 = arith.addi %4, %c2_i32 : i32
    %30 = arith.index_cast %29 : i32 to index
    %c0_15 = arith.constant 0 : index
    %c0_16 = arith.constant 0 : index
    %31 = vector.load %arg7[%30, %c0_15, %c0_16] : memref<18x18x4xbf16, #tpu.memory_space<vmem>>, vector<8x16x4xbf16>
    %32 = vector.shape_cast %31 : vector<8x16x4xbf16> to vector<128x4xbf16>
    %c2_i32_17 = arith.constant 2 : i32
    %33 = arith.addi %4, %c2_i32_17 : i32
    %34 = arith.index_cast %33 : i32 to index
    %c1_18 = arith.constant 1 : index
    %c0_19 = arith.constant 0 : index
    %35 = vector.load %arg7[%34, %c1_18, %c0_19] : memref<18x18x4xbf16, #tpu.memory_space<vmem>>, vector<8x16x4xbf16>
    %36 = vector.shape_cast %35 : vector<8x16x4xbf16> to vector<128x4xbf16>
    %c2_i32_20 = arith.constant 2 : i32
    %37 = arith.addi %4, %c2_i32_20 : i32
    %38 = arith.index_cast %37 : i32 to index
    %c2_21 = arith.constant 2 : index
    %c0_22 = arith.constant 0 : index
    %39 = vector.load %arg7[%38, %c2_21, %c0_22] : memref<18x18x4xbf16, #tpu.memory_space<vmem>>, vector<8x16x4xbf16>
    %40 = vector.shape_cast %39 : vector<8x16x4xbf16> to vector<128x4xbf16>
    %41 = tpu.concatenate %8, %12, %16, %20, %24, %28, %32, %36, %40 in 1 : vector<128x4xbf16>, vector<128x4xbf16>, vector<128x4xbf16>, vector<128x4xbf16>, vector<128x4xbf16>, vector<128x4xbf16>, vector<128x4xbf16>, vector<128x4xbf16>, vector<128x4xbf16> -> vector<128x36xbf16>
    %c0_23 = arith.constant 0 : index
    %c0_24 = arith.constant 0 : index
    %42 = vector.load %arg3[%c0_23, %c0_24] : memref<36x8xbf16, #tpu.memory_space<vmem>>, vector<36x8xbf16>
    %cst = arith.constant dense<0.000000e+00> : vector<128x8xf32>
    %43 = tpu.matmul %41, %42, %cst {dimension_numbers = #tpu.dot_dimension_numbers<[1], [0], [0], [1], [0, 0, 1, 1], [], []>} : vector<128x36xbf16>, vector<36x8xbf16>, vector<128x8xf32> -> vector<128x8xf32>
    %c0_25 = arith.constant 0 : index
    %c0_26 = arith.constant 0 : index
    %44 = vector.load %arg4[%c0_25, %c0_26] : memref<1x8xf32, #tpu.memory_space<vmem>>, vector<1x8xf32>
    %45 = vector.broadcast %44 : vector<1x8xf32> to vector<128x8xf32>
    %46 = arith.addf %43, %45 : vector<128x8xf32>
    %cst_27 = arith.constant 0.000000e+00 : f32
    %47 = vector.broadcast %cst_27 : f32 to vector<128x8xf32>
    %48 = arith.cmpf ogt, %46, %47 : vector<128x8xf32>
    %cst_28 = arith.constant 1.000000e-01 : f32
    %49 = vector.broadcast %cst_28 : f32 to vector<128x8xf32>
    %50 = arith.mulf %49, %46 : vector<128x8xf32>
    %51 = arith.select %48, %46, %50 : vector<128x8xi1>, vector<128x8xf32>
    %52 = vector.shape_cast %51 : vector<128x8xf32> to vector<1x8x16x8xf32>
    %53 = arith.truncf %52 : vector<1x8x16x8xf32> to vector<1x8x16x8xbf16>
    %c0_29 = arith.constant 0 : index
    %c0_30 = arith.constant 0 : index
    %c0_31 = arith.constant 0 : index
    %c0_32 = arith.constant 0 : index
    %54 = vector.load %arg5[%c0_29, %c0_30, %c0_31, %c0_32] : memref<1x8x16x8xbf16, #tpu.memory_space<vmem>>, vector<1x8x16x8xbf16>
    tpu.vector_store %arg5[%c0_29, %c0_30, %c0_31, %c0_32], %53 {strides = array<i32>} : memref<1x8x16x8xbf16, #tpu.memory_space<vmem>>, vector<1x8x16x8xbf16>,
    %c0_33 = arith.constant 0 : index
    %c0_34 = arith.constant 0 : index
    %c0_35 = arith.constant 0 : index
    %c0_36 = arith.constant 0 : index
    %55 = vector.load %arg5[%c0_33, %c0_34, %c0_35, %c0_36] : memref<1x8x16x8xbf16, #tpu.memory_space<vmem>>, vector<1x1x16x8xbf16>
    %56 = vector.shape_cast %55 : vector<1x1x16x8xbf16> to vector<16x8xbf16>
    %57 = arith.extf %56 : vector<16x8xbf16> to vector<16x8xf32>
    %c0_37 = arith.constant 0 : index
    %c1_38 = arith.constant 1 : index
    %c0_39 = arith.constant 0 : index
    %c0_40 = arith.constant 0 : index
    %58 = vector.load %arg5[%c0_37, %c1_38, %c0_39, %c0_40] : memref<1x8x16x8xbf16, #tpu.memory_space<vmem>>, vector<1x1x16x8xbf16>
    %59 = vector.shape_cast %58 : vector<1x1x16x8xbf16> to vector<16x8xbf16>
    %60 = arith.extf %59 : vector<16x8xbf16> to vector<16x8xf32>
    %61 = arith.addf %57, %60 : vector<16x8xf32>
    %c0_41 = arith.constant 0 : index
    %c0_42 = arith.constant 0 : index
    %c0_43 = arith.constant 0 : index
    %62 = vector.load %arg8[%c0_41, %c0_42, %c0_43] : memref<4x16x8xf32, #tpu.memory_space<vmem>>, vector<1x16x8xf32>
    %63 = vector.shape_cast %62 : vector<1x16x8xf32> to vector<16x8xf32>
    %64 = vector.shape_cast %61 : vector<16x8xf32> to vector<1x16x8xf32>
    tpu.vector_store %arg8[%c0_41, %c0_42, %c0_43], %64 {strides = array<i32>} : memref<4x16x8xf32, #tpu.memory_space<vmem>>, vector<1x16x8xf32>,
    %c0_44 = arith.constant 0 : index
    %c2_45 = arith.constant 2 : index
    %c0_46 = arith.constant 0 : index
    %c0_47 = arith.constant 0 : index
    %65 = vector.load %arg5[%c0_44, %c2_45, %c0_46, %c0_47] : memref<1x8x16x8xbf16, #tpu.memory_space<vmem>>, vector<1x1x16x8xbf16>
    %66 = vector.shape_cast %65 : vector<1x1x16x8xbf16> to vector<16x8xbf16>
    %67 = arith.extf %66 : vector<16x8xbf16> to vector<16x8xf32>
    %c0_48 = arith.constant 0 : index
    %c3 = arith.constant 3 : index
    %c0_49 = arith.constant 0 : index
    %c0_50 = arith.constant 0 : index
    %68 = vector.load %arg5[%c0_48, %c3, %c0_49, %c0_50] : memref<1x8x16x8xbf16, #tpu.memory_space<vmem>>, vector<1x1x16x8xbf16>
    %69 = vector.shape_cast %68 : vector<1x1x16x8xbf16> to vector<16x8xbf16>
    %70 = arith.extf %69 : vector<16x8xbf16> to vector<16x8xf32>
    %71 = arith.addf %67, %70 : vector<16x8xf32>
    %c1_51 = arith.constant 1 : index
    %c0_52 = arith.constant 0 : index
    %c0_53 = arith.constant 0 : index
    %72 = vector.load %arg8[%c1_51, %c0_52, %c0_53] : memref<4x16x8xf32, #tpu.memory_space<vmem>>, vector<1x16x8xf32>
    %73 = vector.shape_cast %72 : vector<1x16x8xf32> to vector<16x8xf32>
    %74 = vector.shape_cast %71 : vector<16x8xf32> to vector<1x16x8xf32>
    tpu.vector_store %arg8[%c1_51, %c0_52, %c0_53], %74 {strides = array<i32>} : memref<4x16x8xf32, #tpu.memory_space<vmem>>, vector<1x16x8xf32>,
    %c0_54 = arith.constant 0 : index
    %c4 = arith.constant 4 : index
    %c0_55 = arith.constant 0 : index
    %c0_56 = arith.constant 0 : index
    %75 = vector.load %arg5[%c0_54, %c4, %c0_55, %c0_56] : memref<1x8x16x8xbf16, #tpu.memory_space<vmem>>, vector<1x1x16x8xbf16>
    %76 = vector.shape_cast %75 : vector<1x1x16x8xbf16> to vector<16x8xbf16>
    %77 = arith.extf %76 : vector<16x8xbf16> to vector<16x8xf32>
    %c0_57 = arith.constant 0 : index
    %c5 = arith.constant 5 : index
    %c0_58 = arith.constant 0 : index
    %c0_59 = arith.constant 0 : index
    %78 = vector.load %arg5[%c0_57, %c5, %c0_58, %c0_59] : memref<1x8x16x8xbf16, #tpu.memory_space<vmem>>, vector<1x1x16x8xbf16>
    %79 = vector.shape_cast %78 : vector<1x1x16x8xbf16> to vector<16x8xbf16>
    %80 = arith.extf %79 : vector<16x8xbf16> to vector<16x8xf32>
    %81 = arith.addf %77, %80 : vector<16x8xf32>
    %c2_60 = arith.constant 2 : index
    %c0_61 = arith.constant 0 : index
    %c0_62 = arith.constant 0 : index
    %82 = vector.load %arg8[%c2_60, %c0_61, %c0_62] : memref<4x16x8xf32, #tpu.memory_space<vmem>>, vector<1x16x8xf32>
    %83 = vector.shape_cast %82 : vector<1x16x8xf32> to vector<16x8xf32>
    %84 = vector.shape_cast %81 : vector<16x8xf32> to vector<1x16x8xf32>
    tpu.vector_store %arg8[%c2_60, %c0_61, %c0_62], %84 {strides = array<i32>} : memref<4x16x8xf32, #tpu.memory_space<vmem>>, vector<1x16x8xf32>,
    %c0_63 = arith.constant 0 : index
    %c6 = arith.constant 6 : index
    %c0_64 = arith.constant 0 : index
    %c0_65 = arith.constant 0 : index
    %85 = vector.load %arg5[%c0_63, %c6, %c0_64, %c0_65] : memref<1x8x16x8xbf16, #tpu.memory_space<vmem>>, vector<1x1x16x8xbf16>
    %86 = vector.shape_cast %85 : vector<1x1x16x8xbf16> to vector<16x8xbf16>
    %87 = arith.extf %86 : vector<16x8xbf16> to vector<16x8xf32>
    %c0_66 = arith.constant 0 : index
    %c7 = arith.constant 7 : index
    %c0_67 = arith.constant 0 : index
    %c0_68 = arith.constant 0 : index
    %88 = vector.load %arg5[%c0_66, %c7, %c0_67, %c0_68] : memref<1x8x16x8xbf16, #tpu.memory_space<vmem>>, vector<1x1x16x8xbf16>
    %89 = vector.shape_cast %88 : vector<1x1x16x8xbf16> to vector<16x8xbf16>
    %90 = arith.extf %89 : vector<16x8xbf16> to vector<16x8xf32>
    %91 = arith.addf %87, %90 : vector<16x8xf32>
    %c3_69 = arith.constant 3 : index
    %c0_70 = arith.constant 0 : index
    %c0_71 = arith.constant 0 : index
    %92 = vector.load %arg8[%c3_69, %c0_70, %c0_71] : memref<4x16x8xf32, #tpu.memory_space<vmem>>, vector<1x16x8xf32>
    %93 = vector.shape_cast %92 : vector<1x16x8xf32> to vector<16x8xf32>
    %94 = vector.shape_cast %91 : vector<16x8xf32> to vector<1x16x8xf32>
    tpu.vector_store %arg8[%c3_69, %c0_70, %c0_71], %94 {strides = array<i32>} : memref<4x16x8xf32, #tpu.memory_space<vmem>>, vector<1x16x8xf32>,
    %c0_72 = arith.constant 0 : index
    %c0_73 = arith.constant 0 : index
    %c0_74 = arith.constant 0 : index
    %95 = tpu.strided_load %arg8[%c0_72, %c0_73, %c0_74] {strides = array<i32: 1, 2, 1>} : memref<4x16x8xf32, #tpu.memory_space<vmem>>, vector<4x8x8xf32>
    %c0_75 = arith.constant 0 : index
    %c1_76 = arith.constant 1 : index
    %c0_77 = arith.constant 0 : index
    %96 = tpu.strided_load %arg8[%c0_75, %c1_76, %c0_77] {strides = array<i32: 1, 2, 1>} : memref<4x16x8xf32, #tpu.memory_space<vmem>>, vector<4x8x8xf32>
    %97 = arith.addf %95, %96 : vector<4x8x8xf32>
    %cst_78 = arith.constant 2.500000e-01 : f32
    %98 = vector.broadcast %cst_78 : f32 to vector<4x8x8xf32>
    %99 = arith.mulf %98, %97 : vector<4x8x8xf32>
    %100 = vector.shape_cast %99 : vector<4x8x8xf32> to vector<1x4x8x8xf32>
    %101 = arith.truncf %100 : vector<1x4x8x8xf32> to vector<1x4x8x8xbf16>
    %c0_79 = arith.constant 0 : index
    %c0_80 = arith.constant 0 : index
    %c0_81 = arith.constant 0 : index
    %c0_82 = arith.constant 0 : index
    %102 = vector.load %arg6[%c0_79, %c0_80, %c0_81, %c0_82] : memref<1x4x8x8xbf16, #tpu.memory_space<vmem>>, vector<1x4x8x8xbf16>
    tpu.vector_store %arg6[%c0_79, %c0_80, %c0_81, %c0_82], %101 {strides = array<i32>} : memref<1x4x8x8xbf16, #tpu.memory_space<vmem>>, vector<1x4x8x8xbf16>,
    return
  }
  func.func @transform_0(%arg0: i32, %arg1: i32) -> (i32, i32, i32, i32) {
    %c0_i32 = arith.constant 0 : i32
    %c0_i32_0 = arith.constant 0 : i32
    %c0_i32_1 = arith.constant 0 : i32
    %c0_i32_2 = arith.constant 0 : i32
    return %arg0, %c0_i32, %c0_i32_0, %c0_i32_1 : i32, i32, i32, i32
  }
  func.func @transform_1(%arg0: i32, %arg1: i32) -> (i32, i32) {
    %c0_i32 = arith.constant 0 : i32
    %c0_i32_0 = arith.constant 0 : i32
    %c0_i32_1 = arith.constant 0 : i32
    return %c0_i32, %c0_i32_0 : i32, i32
  }
  func.func @transform_2(%arg0: i32, %arg1: i32) -> (i32, i32) {
    %c0_i32 = arith.constant 0 : i32
    %c0_i32_0 = arith.constant 0 : i32
    %c0_i32_1 = arith.constant 0 : i32
    return %c0_i32, %c0_i32_0 : i32, i32
  }
  func.func @transform_3(%arg0: i32, %arg1: i32) -> (i32, i32, i32, i32) {
    %c0_i32 = arith.constant 0 : i32
    %c0_i32_0 = arith.constant 0 : i32
    %c0_i32_1 = arith.constant 0 : i32
    return %arg0, %arg1, %c0_i32, %c0_i32_0 : i32, i32, i32, i32
  }
  func.func @transform_4(%arg0: i32, %arg1: i32) -> (i32, i32, i32, i32) {
    %c0_i32 = arith.constant 0 : i32
    %c0_i32_0 = arith.constant 0 : i32
    %c0_i32_1 = arith.constant 0 : i32
    return %arg0, %arg1, %c0_i32, %c0_i32_0 : i32, i32, i32, i32
  }
}

</mosaic_0001>

<bundles_post_ra>
// kernel: tpu_custom_call.1
= control target key start
LH: loop header
LB: loop body
LE: loop exit
PB: predicated region body
PF: predicated region fallthrough
CT: control target
= control target key end

     0   :  { %10 = vsyncpa [#allocation5], 0  ;;  %s4434_s0 = inlined_call_operand.vmem [shape: bf16[2,16,16,4], index: 0, kind: input, shape index: {}]   ;;  %s4435_s1 = inlined_call_operand.vmem [shape: bf16[36,8], index: 1, kind: input, shape index: {}]   ;;  %s4436_s2 = inlined_call_operand.vmem [shape: f32[1,8], index: 2, kind: input, shape index: {}]   ;;  %s4437_s3 = inlined_call_operand.vmem [shape: bf16[2,16,16,8], index: 3, kind: output, shape index: {0}]   ;;  %s4438_s4 = inlined_call_operand.hbm [shape: bf16[2,8,8,8], index: 4, kind: output, shape index: {1}]  }
   0x1   :  { %12 = vsyncpa [#allocation5 + $0x1], 0  ;;  %s3166_s15 = smov 0   ;;  %s3168_s16 = smov 0  }
   0x2   :  { %s3170_s17 = smov 0   ;;  %s3172_s18 = smov 0  }
   0x3   :  { %s3174_s19 = smov 0   ;;  %s3176_s20 = smov 0  }
   0x4   :  { %s3178_s21 = smov 0   ;;  %s3180_s22 = smov 0  }
   0x5 LB: > { %s2637_s23 = sadd.s32 4294967295, %s3129_s22   ;;  %s2638_s24 = sadd.s32 4294967294, %s3129_s22   ;;  %s3129_s22 = sphi %s3180_s22, %s18_s22   ;;  %s3125_s21 = sphi %s3178_s21, %s4465_s21   ;;  %s3121_s20 = sphi %s3176_s20, %s4464_s20   ;;  %s3117_s19 = sphi %s3174_s19, %s4463_s19   ;;  %s3113_s18 = sphi %s3172_s18, %s4462_s18   ;;  %s3109_s17 = sphi %s3170_s17, %s4461_s17   ;;  %s3105_s16 = sphi %s3168_s16, %s4460_s16   ;;  %s3101_s15 = sphi %s3166_s15, %s4459_s15  }
   0x6   : > { %s27_s25 = sadd.s32 1, %s3121_s20  ;;  %s30_s26 = sadd.s32 1, %s3125_s21 }
   0x7   : > { %p28_p0 = scmp.ge.s32.totalorder %s27_s25, 2  ;;  %p145_p1 = scmp.ne.s32.totalorder %s3109_s17, %s3105_s16 }
   0x8   : > { %p146_p2 = scmp.eq.s32.totalorder %s2637_s23, 3  ;;  %p151_p5 = scmp.ne.s32.totalorder %s3105_s16, %s3101_s15 }
   0x9   : > { %s4467_s25 = smov (%p28_p0, %s27_s25), 0  ;;  %s4469_s26 = smov (!%p28_p0, %s30_s26), %s3125_s21 }
   0xa   : > { %4442 = sst [smem:[#allocation7_spill]] %s4467_s25  ;;  %s131_s27 = ssub.s32 %s3121_s20, %s4467_s25 }
   0xb   : > { %p3217_p3 = por %p146_p2, %p145_p1  ;;  %p32_p4 = scmp.ge.s32.totalorder %s4469_s26, 2 }
   0xc   : > { %p152_p6 = scmp.eq.s32.totalorder %s2638_s24, 3  ;;  %p2641_p7 = scmp.ge.s32.totalorder %s3129_s22, 1 }
   0xd   : > { %s4471_s26 = smov (%p32_p4, %s4469_s26), 0  ;;  %p184_p9 = scmp.lt.s32.totalorder %s3129_s22, 5 }
   0xe   : > { %4444 = sst [smem:[#allocation8_spill]] %s4471_s26  ;;  %p3226_p8 = por %p152_p6, %p151_p5 }
   0xf   : > { %s130_s30 = ssub.s32 %s3125_s21, %s4471_s26  ;;  %s135_s5 = sadd.s32 1, %s3109_s17 }
  0x10   : > { %s132_s6 = sor.u32 %s131_s27, %s130_s30  ;;  %p185_p10 = pnand %p2641_p7, %p184_p9 }
  0x11   : > { %p133_p11 = scmp.eq.s32.totalorder %s132_s6, 0  ;;  %s4441_s8 = sand.u32 (!%p185_p10), 1, %s3105_s16  }
  0x12   : > { %188 = sbr.rel (%p185_p10) target bundleno = 612 (0x264), region = 32  ;;  %p220_p12 = scmp.lt.s32.totalorder (!%p185_p10), %s3117_s19, 1 }
  0x13   : > { %s3235_s7 = scalar_select %p133_p11, %s3109_s17, %s135_s5  }
  0x14   : > { %s2642_s9 = sshll.u32 (!%p185_p10), %s4441_s8, 4  ;;  %s2645_s10 = sshll.u32 (!%p185_p10), %s3113_s18, 3 }
  0x15   : > { %p228_p13 = scmp.lt.s32.totalorder (!%p185_p10), %s2645_s10, 15  ;;  %s3253_s8 = scalar_lea.vmem (!%p185_p10), [#allocation4], %s2642_s9 }
  0x16   : > { %p2649_p0 = scmp.ne.s32.totalorder (!%p185_p10), %s3113_s18, 0 }
  0x17   : > { %s221_s11 = scalar_select %p220_p12, %s3117_s19, 1 }
  0x18   : > { %s4473_s10 = smov (!%p228_p13, %s2645_s10), 15 }
  0x19   : > { %s2877_s12 = sshll.u32 %s221_s11, 7  ;;  %s2647_s13 = sshll.u32 %s221_s11, 5 }
  0x1a   : > { %s3246_s24 = scalar_lea.vmem %s4434_s0, %s2877_s12  ;;  %s2646_s27 = sshll.u32 %s4473_s10, 1 }
  0x1b   : > { %s232_s30 = sadd.s32 %s2647_s13, %s2646_s27  ;;  %241 = sbr.rel (%p2649_p0) target bundleno = 135 (0x87), region = 36 }
  0x1c   : > { %s2648_s5 = sshll.u32 %s232_s30, 2 }
  0x1d   : > { %s3251_s25 = scalar_lea.vmem %s4437_s3, %s2648_s5 }
  0x20   : > { %vm242_vm0 = vcmask 27648   ;;  %v3131_v0 = vmov 0   ;;  %vm245_vm1 = vcmask 24576   ;;  %v298_v1 = vld [vmem:[%s3246_s24] sm:$0xf] }
  0x21   : > { %247 = vst.msk [vmem:[#allocation2 + $0xc] sm:$0xf] %vm242_vm0, %v3131_v0  ;;  %v299_v2 = vld [vmem:[%s3246_s24 + $0x4] sm:$0xf]  ;;  %v3331_v3 = vld [vmem:[%s3246_s24 + $0x8] sm:$0xf] }
  0x22   : > { %243 = vst.msk [vmem:[#allocation2] sm:$0xf] %vm242_vm0, %v3131_v0  ;;  %v334_v4 = vshrl.u32 %v298_v1, 16  ;;  %vm655_vm2 = vsmask.f32 7938  ;;  %v342_v6 = vshrl.u32 %v299_v2, 16 }
  0x23   : > { %244 = vst.msk [vmem:[#allocation2 + $0x4] sm:$0xf] %vm242_vm0, %v3131_v0  ;;  %v3336_v5 = vld [vmem:[%s3246_s24 + $0xc] sm:$0xf]  ;;  %v3341_v7 = vld [vmem:[%s3246_s24 + $0x10] sm:$0xf]  ;;  %vm3405_vm5 = vmand %vm242_vm0, %vm655_vm2 }
  0x24   : > { %248 = vst.msk [vmem:[#allocation2 + $0x10] sm:$0xf] %vm242_vm0, %v3131_v0  ;;  %v351_v8 = vshrl.u32 %v3331_v3, 16  ;;  %v3347_v9 = vld [vmem:[%s3246_s24 + $0x14] sm:$0xf]  ;;  %v359_v10 = vshrl.u32 %v3336_v5, 16 }
  0x25   : > { %250 = vst.msk [vmem:[#allocation2 + $0x18] sm:$0xf] %vm242_vm0, %v3131_v0  ;;  %vm330_vm3 = vsmask.f32 256  ;;  %v3354_v11 = vrot.slane %v334_v4, 7  ;;  %v368_v12 = vshrl.u32 %v3341_v7, 16 }
  0x26   : > { %251 = vst.msk [vmem:[#allocation2 + $0x1c] sm:$0xf] %vm242_vm0, %v3131_v0  ;;  %v3358_v13 = vld [vmem:[%s3246_s24 + $0x18] sm:$0xf]  ;;  %v3362_v14 = vrot.slane %v342_v6, 7  ;;  %v376_v15 = vshrl.u32 %v3347_v9, 16  ;;  %vm3442_vm7 = vmand %vm245_vm1, %vm330_vm3 }
  0x27   : > { %253 = vst.msk [vmem:[#allocation2 + $0x24] sm:$0xf] %vm242_vm0, %v3131_v0  ;;  %v3366_v16 = vld [vmem:[%s3246_s24 + $0x1c] sm:$0xf]  ;;  %v337_v17 = vshll.u32 %v298_v1, 16  ;;  %v3370_v18 = vrot.slane %v351_v8, 7 }
  0x28   : > { %254 = vst.msk [vmem:[#allocation2 + $0x28] sm:$0xf] %vm242_vm0, %v3131_v0  ;;  %v3373_v19 = vld [vmem:[%s3246_s24 + $0x20] sm:$0xf]  ;;  %vm331_vm4 = vsmask.f32 4368 }
  0x29   : > { %256 = vst.msk [vmem:[#allocation2 + $0x30] sm:$0xf] %vm242_vm0, %v3131_v0  ;;  %v3377_v20 = vrot.slane %v359_v10, 7  ;;  %v385_v21 = vshrl.u32 %v3358_v13, 16  ;;  %v340_v22 = vrot.slane %v3354_v11, 4  ;;  %v345_v23 = vshll.u32 %v299_v2, 16  ;;  %vm3427_vm6 = vmor %vm330_vm3, %vm331_vm4 }
  0x2a   : > { %257 = vst.msk [vmem:[#allocation2 + $0x34] sm:$0xf] %vm242_vm0, %v3131_v0  ;;  %v3383_v24 = vrot.slane %v368_v12, 7  ;;  %v393_v25 = vshrl.u32 %v3366_v16, 16  ;;  %v657_v26 = vld [vmem:[#allocation2 + $0xc] sm:$0xf]  ;;  %v339_v31 = vor.u32 %v337_v17, %v3354_v11 }
  0x2b   : > { %259 = vst.msk [vmem:[#allocation2 + $0x3c] sm:$0xf] %vm242_vm0, %v3131_v0  ;;  %v349_v27 = vrot.slane %v3362_v14, 4  ;;  %v354_v28 = vshll.u32 %v3331_v3, 16  ;;  %v3390_v29 = vrot.slane %v376_v15, 7  ;;  %v402_v30 = vshrl.u32 %v3373_v19, 16 }
  0x2c   : > { %260 = vst.msk [vmem:[#allocation2 + $0x40] sm:$0xf] %vm242_vm0, %v3131_v0  ;;  %v357_v32 = vrot.slane %v3370_v18, 4  ;;  %v362_v33 = vshll.u32 %v3336_v5, 16  ;;  %v3399_v34 = vld [vmem:[%s3246_s24 + $0x24] sm:$0xf]  ;;  %v347_v40 = vor.u32 %v345_v23, %v3362_v14  ;;  %v658_v50 = vsel %vm3405_vm5, %v339_v31, %v657_v26 }
  0x2d   : > { %262 = vst.msk [vmem:[#allocation2 + $0x48] sm:$0xf] %vm242_vm0, %v3131_v0  ;;  %v366_v36 = vrot.slane %v3377_v20, 4  ;;  %v371_v37 = vshll.u32 %v3341_v7, 16  ;;  %v379_v38 = vshll.u32 %v3347_v9, 16  ;;  %v3412_v39 = vrot.slane %v385_v21, 7 }
  0x2e   : > { %263 = vst.msk [vmem:[#allocation2 + $0x4c] sm:$0xf] %vm242_vm0, %v3131_v0  ;;  %v374_v41 = vrot.slane %v3383_v24, 4  ;;  %v3418_v42 = vrot.slane %v393_v25, 7  ;;  %v3421_v43 = vld [vmem:[%s3246_s24 + $0x28] sm:$0xf]  ;;  %v356_v53 = vor.u32 %v354_v28, %v3370_v18  ;;  %v364_v54 = vor.u32 %v362_v33, %v3377_v20 }
  0x2f   : > { %265 = vst.msk [vmem:[#allocation2 + $0x54] sm:$0xf] %vm242_vm0, %v3131_v0  ;;  %v666_v45 = vld [vmem:[#allocation2 + $0x18] sm:$0xf]  ;;  %v383_v46 = vrot.slane %v3390_v29, 4  ;;  %v388_v47 = vshll.u32 %v3358_v13, 16  ;;  %v348_v60 = vsel %vm3427_vm6, %v340_v22, %v347_v40  ;;  %v373_v61 = vor.u32 %v371_v37, %v3383_v24 }
  0x30   : > { %266 = vst.msk [vmem:[#allocation2 + $0x58] sm:$0xf] %vm242_vm0, %v3131_v0  ;;  %v3433_v48 = vrot.slane %v402_v30, 7  ;;  %v410_v49 = vshrl.u32 %v3399_v34, 16  ;;  %v3449_v55 = vld [vmem:[%s3246_s24 + $0x2c] sm:$0xf]  ;;  %v381_v5 = vor.u32 %v379_v38, %v3390_v29  ;;  %v667_v8 = vsel %vm3405_vm5, %v356_v53, %v666_v45 }
  0x31   : > { %268 = vst.msk [vmem:[#allocation2 + $0x60] sm:$0xf] %vm242_vm0, %v3131_v0  ;;  %v391_v56 = vrot.slane %v3412_v39, 4  ;;  %v396_v57 = vshll.u32 %v3366_v16, 16  ;;  %v405_v58 = vshll.u32 %v3373_v19, 16  ;;  %v419_v59 = vshrl.u32 %v3421_v43, 16 }
  0x32   : > { %269 = vst.msk [vmem:[#allocation2 + $0x64] sm:$0xf] %vm242_vm0, %v3131_v0  ;;  %v673_v62 = vld [vmem:[#allocation2 + $0x24] sm:$0xf]  ;;  %v400_v63 = vrot.slane %v3418_v42, 4  ;;  %v413_v1 = vshll.u32 %v3399_v34, 16  ;;  %v365_v11 = vsel %vm3427_vm6, %v357_v32, %v364_v54  ;;  %v390_v18 = vor.u32 %v388_v47, %v3412_v39 }
  0x33   : > { %271 = vst.msk [vmem:[#allocation2 + $0x6c] sm:$0xf] %vm242_vm0, %v3131_v0  ;;  %v3465_v2 = vld [vmem:[%s3246_s24 + $0x30] sm:$0xf]  ;;  %v408_v6 = vrot.slane %v3433_v48, 4  ;;  %v427_v7 = vshrl.u32 %v3449_v55, 16  ;;  %v398_v19 = vor.u32 %v396_v57, %v3418_v42  ;;  %v407_v20 = vor.u32 %v405_v58, %v3433_v48 }
  0x34   : > { %272 = vst.msk [vmem:[#allocation2 + $0x70] sm:$0xf] %vm242_vm0, %v3131_v0  ;;  %v412_v10 = vrot.slane %v410_v49, 7  ;;  %v680_v12 = vld [vmem:[#allocation2 + $0x30] sm:$0xf]  ;;  %v421_v14 = vrot.slane %v419_v59, 7  ;;  %v674_v23 = vsel %vm3405_vm5, %v373_v61, %v673_v62  ;;  %v382_v24 = vsel %vm3427_vm6, %v374_v41, %v381_v5 }
  0x35   : > { %274 = vst.msk [vmem:[#allocation2 + $0x78] sm:$0xf] %vm242_vm0, %v3131_v0  ;;  %v3480_v13 = vld [vmem:[#allocation2 + $0x3c] sm:$0xf]  ;;  %v436_v15 = vshrl.u32 %v3465_v2, 16  ;;  %v429_v26 = vrot.slane %v427_v7, 7  ;;  %v681_v38 = vsel %vm3405_vm5, %v390_v18, %v680_v12  ;;  %v399_v39 = vsel %vm3427_vm6, %v391_v56, %v398_v19 }
  0x36   : > { %275 = vst.msk [vmem:[#allocation2 + $0x7c] sm:$0xf] %vm242_vm0, %v3131_v0  ;;  %v3484_v16 = vld [vmem:[%s3246_s24 + $0x34] sm:$0xf]  ;;  %v3492_v21 = vld [vmem:[%s3246_s24 + $0x38] sm:$0xf]  ;;  %v415_v29 = vor.u32 %v413_v1, %v412_v10  ;;  %v688_v40 = vsel %vm3405_vm5, %v407_v20, %v3480_v13 }
  0x37   : > { %277 = vst.msk [vmem:[#allocation2 + $0x84] sm:$0xf] %vm242_vm0, %v3131_v0  ;;  %v3495_v22 = vld [vmem:[%s3246_s24 + $0x3c] sm:$0xf]  ;;  %v417_v30 = vrot.slane %v412_v10, 4  ;;  %v444_v32 = vshrl.u32 %v3484_v16, 16 }
  0x38   : > { %278 = vst.msk [vmem:[#allocation2 + $0x88] sm:$0xf] %vm242_vm0, %v3131_v0  ;;  %v3506_v33 = vrot.slane %v436_v15, 7  ;;  %v439_v34 = vshll.u32 %v3465_v2, 16  ;;  %v461_v37 = vshrl.u32 %v3495_v22, 16  ;;  %v434_v48 = vrot.slane %v429_v26, 4 }
  0x39   : > { %280 = vst.msk [vmem:[#allocation2 + $0x90] sm:$0xf] %vm242_vm0, %v3131_v0  ;;  %v694_v41 = vld [vmem:[#allocation2 + $0x48] sm:$0xf]  ;;  %v3519_v42 = vld [vmem:[%s3246_s24 + $0x40] sm:$0xf] }
  0x3a   : > { %281 = vst.msk [vmem:[#allocation2 + $0x94] sm:$0xf] %vm242_vm0, %v3131_v0  ;;  %v447_v53 = vshll.u32 %v3484_v16, 16  ;;  %v456_v54 = vshll.u32 %v3492_v21, 16  ;;  %v701_v57 = vld [vmem:[#allocation2 + $0x54] sm:$0xf]  ;;  %v441_v61 = vor.u32 %v439_v34, %v3506_v33 }
  0x3b   : > { %283 = vst.msk [vmem:[#allocation2 + $0x9c] sm:$0xf] %vm242_vm0, %v3131_v0  ;;  %v470_v58 = vshrl.u32 %v3519_v42, 16  ;;  %v464_v1 = vshll.u32 %v3495_v22, 16  ;;  %v317_v7 = vld [vmem:[%s3246_s24 + $0x4c] sm:$0xf] }
  0x3c   : > { %284 = vst.msk [vmem:[#allocation2 + $0xa0] sm:$0xf] %vm242_vm0, %v3131_v0  ;;  %v473_v13 = vshll.u32 %v3519_v42, 16  ;;  %v702_v16 = vsel %vm3405_vm5, %v441_v61, %v701_v57 }
  0x3d   : > { %286 = vst.msk [vmem:[#allocation2 + $0xa8] sm:$0xf] %vm242_vm0, %v3131_v0  ;;  %v472_v12 = vrot.slane %v470_v58, 7  ;;  %v321_v58 = vld [vmem:[%s3246_s24 + $0x5c] sm:$0xf] }
  0x3e   : > { %287 = vst.msk [vmem:[#allocation2 + $0xac] sm:$0xf] %vm242_vm0, %v3131_v0 }
  0x3f   : > { %289 = vst.msk [vmem:[#allocation2 + $0xb4] sm:$0xf] %vm242_vm0, %v3131_v0 }
  0x40   : > { %290 = vst.msk [vmem:[#allocation2 + $0xb8] sm:$0xf] %vm242_vm0, %v3131_v0 }
  0x41   : > { %292 = vst.msk [vmem:[#allocation2 + $0xc0] sm:$0xf] %vm242_vm0, %v3131_v0 }
  0x42   : > { %293 = vst.msk [vmem:[#allocation2 + $0xc4] sm:$0xf] %vm242_vm0, %v3131_v0 }
  0x43   : > { %295 = vst.msk [vmem:[#allocation2 + $0xcc] sm:$0xf] %vm242_vm0, %v3131_v0 }
  0x44   : > { %296 = vst.msk [vmem:[#allocation2 + $0xd0] sm:$0xf] %vm242_vm0, %v3131_v0 }
  0x45   : > { %249 = vst.msk [vmem:[#allocation2 + $0x14] sm:$0x1] %vm245_vm1, %v3131_v0 }
  0x46   : > { %246 = vst.msk [vmem:[#allocation2 + $0x8] sm:$0x1] %vm245_vm1, %v3131_v0 }
  0x47   : > { %252 = vst.msk [vmem:[#allocation2 + $0x20] sm:$0x1] %vm245_vm1, %v3131_v0 }
  0x48   : > { %255 = vst.msk [vmem:[#allocation2 + $0x2c] sm:$0x1] %vm245_vm1, %v3131_v0 }
  0x49   : > { %258 = vst.msk [vmem:[#allocation2 + $0x38] sm:$0x1] %vm245_vm1, %v3131_v0 }
  0x4a   : > { %261 = vst.msk [vmem:[#allocation2 + $0x44] sm:$0x1] %vm245_vm1, %v3131_v0 }
  0x4b   : > { %264 = vst.msk [vmem:[#allocation2 + $0x50] sm:$0x1] %vm245_vm1, %v3131_v0 }
  0x4c   : > { %267 = vst.msk [vmem:[#allocation2 + $0x5c] sm:$0x1] %vm245_vm1, %v3131_v0  ;;  %v663_v52 = vld [vmem:[#allocation2 + $0x14] sm:$0x1] }
  0x4d   : > { %270 = vst.msk [vmem:[#allocation2 + $0x68] sm:$0x1] %vm245_vm1, %v3131_v0  ;;  %v664_v3 = vsel %vm3442_vm7, %v349_v27, %v663_v52  ;;  %v430_v27 = vshll.u32 %v3449_v55, 16  ;;  %v446_v52 = vrot.slane %v444_v32, 7  ;;  %v416_v55 = vsel %vm3427_vm6, %v408_v6, %v415_v29  ;;  %v715_v32 = vld [vmem:[#allocation2 + $0x6c] sm:$0xf] }
  0x4e   : > { %273 = vst.msk [vmem:[#allocation2 + $0x74] sm:$0x1] %vm245_vm1, %v3131_v0  ;;  %v670_v4 = vld [vmem:[#allocation2 + $0x20] sm:$0x1]  ;;  %v498_v29 = vshll.u32 %v317_v7, 16 }
  0x4f   : > { %276 = vst.msk [vmem:[#allocation2 + $0x80] sm:$0x1] %vm245_vm1, %v3131_v0  ;;  %v677_v9 = vld [vmem:[#allocation2 + $0x2c] sm:$0x1]  ;;  %v671_v17 = vsel %vm3442_vm7, %v366_v36, %v670_v4  ;;  %v453_v36 = vshrl.u32 %v3492_v21, 16  ;;  %v432_v47 = vor.u32 %v430_v27, %v429_v26  ;;  %v451_v10 = vrot.slane %v446_v52, 4 }
  0x50   : > { %279 = vst.msk [vmem:[#allocation2 + $0x8c] sm:$0x1] %vm245_vm1, %v3131_v0  ;;  %v684_v25 = vld [vmem:[#allocation2 + $0x38] sm:$0x1]  ;;  %v678_v28 = vsel %vm3442_vm7, %v383_v46, %v677_v9  ;;  %v425_v46 = vrot.slane %v421_v14, 4  ;;  %v449_v9 = vor.u32 %v447_v53, %v446_v52 }
  0x51   : > { %282 = vst.msk [vmem:[#allocation2 + $0x98] sm:$0x1] %vm245_vm1, %v3131_v0  ;;  %v691_v31 = vld [vmem:[#allocation2 + $0x44] sm:$0x1]  ;;  %v455_v62 = vrot.slane %v453_v36, 7 }
  0x52   : > { %285 = vst.msk [vmem:[#allocation2 + $0xa4] sm:$0x1] %vm245_vm1, %v3131_v0  ;;  %v698_v49 = vld [vmem:[#allocation2 + $0x50] sm:$0x1]  ;;  %v692_v56 = vsel %vm3442_vm7, %v417_v30, %v691_v31  ;;  %v319_v30 = vld [vmem:[%s3246_s24 + $0x54] sm:$0xf]  ;;  %v475_v31 = vor.u32 %v473_v13, %v472_v12 }
  0x53   : > { %288 = vst.msk [vmem:[#allocation2 + $0xb0] sm:$0x1] %vm245_vm1, %v3131_v0  ;;  %v699_v4 = vsel %vm3442_vm7, %v434_v48, %v698_v49  ;;  %v705_v5 = vld [vmem:[#allocation2 + $0x5c] sm:$0x1]  ;;  %v459_v18 = vrot.slane %v455_v62, 4  ;;  %v512_v36 = vshrl.u32 %v319_v30, 16 }
  0x54   : > { %291 = vst.msk [vmem:[#allocation2 + $0xbc] sm:$0x1] %vm245_vm1, %v3131_v0  ;;  %v712_v20 = vld [vmem:[#allocation2 + $0x68] sm:$0x1]  ;;  %v318_v21 = vld [vmem:[%s3246_s24 + $0x50] sm:$0xf]  ;;  %v706_v27 = vsel %vm3442_vm7, %v451_v10, %v705_v5 }
  0x55   : > { %294 = vst.msk [vmem:[#allocation2 + $0xc8] sm:$0x1] %vm245_vm1, %v3131_v0  ;;  %v507_v42 = vshll.u32 %v318_v21, 16  ;;  %v320_v48 = vld [vmem:[%s3246_s24 + $0x58] sm:$0xf]  ;;  %v515_v52 = vshll.u32 %v319_v30, 16 }
  0x56   : > { %297 = vst.msk [vmem:[#allocation2 + $0xd4] sm:$0x1] %vm245_vm1, %v3131_v0  ;;  %v422_v0 = vshll.u32 %v3421_v43, 16  ;;  %v3522_v43 = vld [vmem:[%s3246_s24 + $0x44] sm:$0xf]  ;;  %v521_v53 = vshrl.u32 %v320_v48, 16 }
  0x57   : > { %659 = vst [vmem:[#allocation2 + $0xc] sm:$0xf] %v658_v50  ;;  %v685_v50 = vsel %vm3442_vm7, %v400_v63, %v684_v25  ;;  %v478_v59 = vshrl.u32 %v3522_v43, 16  ;;  %v463_v63 = vrot.slane %v461_v37, 7  ;;  %v481_v15 = vshll.u32 %v3522_v43, 16 }
  0x58   : > { %660 = vst.msk [vmem:[#allocation2 + $0x10] sm:$0xf] %vm242_vm0, %v348_v60  ;;  %v424_v45 = vor.u32 %v422_v0, %v421_v14  ;;  %v316_v60 = vld [vmem:[%s3246_s24 + $0x48] sm:$0xf]  ;;  %v495_v0 = vshrl.u32 %v317_v7, 16  ;;  %v504_v25 = vshrl.u32 %v318_v21, 16 }
  0x59   : > { %665 = vst [vmem:[#allocation2 + $0x14] sm:$0x1] %v664_v3  ;;  %v433_v3 = vsel %vm3427_vm6, %v425_v46, %v432_v47  ;;  %v487_v6 = vshrl.u32 %v316_v60, 16  ;;  %v480_v14 = vrot.slane %v478_v59, 7  ;;  %v466_v19 = vor.u32 %v464_v1, %v463_v63  ;;  %v322_v10 = vld [vmem:[%s3246_s24 + $0x60] sm:$0xf] }
  0x5a   : > { %668 = vst [vmem:[#allocation2 + $0x18] sm:$0xf] %v667_v8  ;;  %v695_v2 = vsel %vm3405_vm5, %v424_v45, %v694_v41  ;;  %v442_v8 = vrot.slane %v3506_v33, 4  ;;  %v468_v22 = vrot.slane %v463_v63, 4  ;;  %v476_v33 = vrot.slane %v472_v12, 4 }
  0x5b   : > { %669 = vst.msk [vmem:[#allocation2 + $0x1c] sm:$0xf] %vm242_vm0, %v365_v11  ;;  %v708_v11 = vld [vmem:[#allocation2 + $0x60] sm:$0xf]  ;;  %v483_v34 = vor.u32 %v481_v15, %v480_v14  ;;  %v506_v41 = vrot.slane %v504_v25, 7  ;;  %v485_v45 = vrot.slane %v480_v14, 4 }
  0x5c   : > { %672 = vst [vmem:[#allocation2 + $0x20] sm:$0x1] %v671_v17  ;;  %v458_v17 = vor.u32 %v456_v54, %v455_v62  ;;  %v450_v26 = vsel %vm3427_vm6, %v442_v8, %v449_v9  ;;  %v713_v43 = vsel %vm3442_vm7, %v468_v22, %v712_v20  ;;  %v716_v54 = vsel %vm3405_vm5, %v475_v31, %v715_v32  ;;  %v733_v8 = vld [vmem:[#allocation2 + $0x8c] sm:$0x1]  ;;  %v736_v9 = vld [vmem:[#allocation2 + $0x90] sm:$0xf] }
  0x5d   : > { %675 = vst [vmem:[#allocation2 + $0x24] sm:$0xf] %v674_v23  ;;  %v489_v23 = vrot.slane %v487_v6, 7  ;;  %v524_v57 = vshll.u32 %v320_v48, 16  ;;  %v523_v61 = vrot.slane %v521_v53, 7  ;;  %v529_v62 = vshrl.u32 %v321_v58, 16 }
  0x5e   : > { %676 = vst.msk [vmem:[#allocation2 + $0x28] sm:$0xf] %vm242_vm0, %v382_v24  ;;  %v490_v24 = vshll.u32 %v316_v60, 16  ;;  %v709_v37 = vsel %vm3405_vm5, %v458_v17, %v708_v11  ;;  %v509_v60 = vor.u32 %v507_v42, %v506_v41  ;;  %v510_v5 = vrot.slane %v506_v41, 4  ;;  %v323_v17 = vld [vmem:[%s3246_s24 + $0x64] sm:$0xf] }
  0x5f   : > { %679 = vst [vmem:[#allocation2 + $0x2c] sm:$0x1] %v678_v28  ;;  %v497_v28 = vrot.slane %v495_v0, 7  ;;  %v493_v47 = vrot.slane %v489_v23, 4  ;;  %v526_v0 = vor.u32 %v524_v57, %v523_v61  ;;  %v531_v11 = vrot.slane %v529_v62, 7 }
  0x60   : > { %682 = vst [vmem:[#allocation2 + $0x30] sm:$0xf] %v681_v38  ;;  %v467_v38 = vsel %vm3427_vm6, %v459_v18, %v466_v19  ;;  %v492_v46 = vor.u32 %v490_v24, %v489_v23  ;;  %v538_v12 = vshrl.u32 %v322_v10, 16  ;;  %v541_v13 = vshll.u32 %v322_v10, 16  ;;  %v740_v23 = vld [vmem:[#allocation2 + $0x98] sm:$0x1] }
  0x61   : > { %683 = vst.msk [vmem:[#allocation2 + $0x34] sm:$0xf] %vm242_vm0, %v399_v39  ;;  %v719_v39 = vld [vmem:[#allocation2 + $0x74] sm:$0x1]  ;;  %v500_v49 = vor.u32 %v498_v29, %v497_v28  ;;  %v502_v59 = vrot.slane %v497_v28, 4  ;;  %v536_v19 = vrot.slane %v531_v11, 4 }
  0x62   : > { %686 = vst [vmem:[#allocation2 + $0x38] sm:$0x1] %v685_v50  ;;  %v514_v50 = vrot.slane %v512_v36, 7  ;;  %v720_v63 = vsel %vm3442_vm7, %v485_v45, %v719_v39  ;;  %v540_v20 = vrot.slane %v538_v12, 7  ;;  %v546_v21 = vshrl.u32 %v323_v17, 16 }
  0x63   : > { %689 = vst [vmem:[#allocation2 + $0x3c] sm:$0xf] %v688_v40  ;;  %v722_v40 = vld [vmem:[#allocation2 + $0x78] sm:$0xf]  ;;  %v549_v24 = vshll.u32 %v323_v17, 16  ;;  %v741_v36 = vsel %vm3442_vm7, %v536_v19, %v740_v23 }
  0x64   : > { %690 = vst.msk [vmem:[#allocation2 + $0x40] sm:$0xf] %vm242_vm0, %v416_v55  ;;  %v484_v55 = vsel %vm3427_vm6, %v476_v33, %v483_v34  ;;  %v723_v1 = vsel %vm3405_vm5, %v492_v46, %v722_v40  ;;  %v517_v6 = vor.u32 %v515_v52, %v514_v50  ;;  %v519_v7 = vrot.slane %v514_v50, 4  ;;  %v743_v28 = vld [vmem:[#allocation2 + $0x9c] sm:$0xf] }
  0x65   : > { %693 = vst [vmem:[#allocation2 + $0x44] sm:$0x1] %v692_v56  ;;  %v726_v56 = vld [vmem:[#allocation2 + $0x80] sm:$0x1]  ;;  %v324_v29 = vld [vmem:[%s3246_s24 + $0x68] sm:$0xf] }
  0x66   : > { %696 = vst [vmem:[#allocation2 + $0x48] sm:$0xf] %v695_v2  ;;  %v729_v2 = vld [vmem:[#allocation2 + $0x84] sm:$0xf]  ;;  %v727_v14 = vsel %vm3442_vm7, %v502_v59, %v726_v56  ;;  %v518_v22 = vsel %vm3427_vm6, %v510_v5, %v517_v6  ;;  %v734_v25 = vsel %vm3442_vm7, %v519_v7, %v733_v8  ;;  %v544_v30 = vrot.slane %v540_v20, 4 }
  0x67   : > { %697 = vst.msk [vmem:[#allocation2 + $0x4c] sm:$0xf] %vm242_vm0, %v433_v3  ;;  %v532_v3 = vshll.u32 %v321_v58, 16  ;;  %v730_v15 = vsel %vm3405_vm5, %v509_v60, %v729_v2  ;;  %v548_v31 = vrot.slane %v546_v21, 7  ;;  %v555_v32 = vshrl.u32 %v324_v29, 16 }
  0x68   : > { %700 = vst [vmem:[#allocation2 + $0x50] sm:$0x1] %v699_v4  ;;  %v501_v4 = vsel %vm3427_vm6, %v493_v47, %v500_v49  ;;  %v558_v33 = vshll.u32 %v324_v29, 16  ;;  %v750_v45 = vld [vmem:[#allocation2 + $0xa8] sm:$0xf] }
  0x69   : > { %703 = vst [vmem:[#allocation2 + $0x54] sm:$0xf] %v702_v16  ;;  %v527_v16 = vrot.slane %v523_v61, 4  ;;  %v534_v18 = vor.u32 %v532_v3, %v531_v11  ;;  %v551_v39 = vor.u32 %v549_v24, %v548_v31  ;;  %v553_v40 = vrot.slane %v548_v31, 4  ;;  %v326_v50 = vld [vmem:[%s3246_s24 + $0x70] sm:$0xf] }
  0x6a   : > { %704 = vst.msk [vmem:[#allocation2 + $0x58] sm:$0xf] %vm242_vm0, %v450_v26  ;;  %v737_v26 = vsel %vm3405_vm5, %v526_v0, %v736_v9  ;;  %v557_v41 = vrot.slane %v555_v32, 7  ;;  %v754_v57 = vld [vmem:[#allocation2 + $0xb0] sm:$0x1] }
  0x6b   : > { %707 = vst [vmem:[#allocation2 + $0x5c] sm:$0x1] %v706_v27  ;;  %v543_v27 = vor.u32 %v541_v13, %v540_v20  ;;  %v535_v34 = vsel %vm3427_vm6, %v527_v16, %v534_v18  ;;  %v552_v47 = vsel %vm3427_vm6, %v544_v30, %v551_v39  ;;  %v327_v58 = vld [vmem:[%s3246_s24 + $0x74] sm:$0xf]  ;;  %v328_v5 = vld [vmem:[%s3246_s24 + $0x78] sm:$0xf] }
  0x6c   : > { %710 = vst [vmem:[#allocation2 + $0x60] sm:$0xf] %v709_v37  ;;  %v747_v37 = vld [vmem:[#allocation2 + $0xa4] sm:$0x1]  ;;  %v560_v49 = vor.u32 %v558_v33, %v557_v41  ;;  %v561_v52 = vrot.slane %v557_v41, 4  ;;  %v580_v62 = vshrl.u32 %v327_v58, 16 }
  0x6d   : > { %711 = vst.msk [vmem:[#allocation2 + $0x64] sm:$0xf] %vm242_vm0, %v467_v38  ;;  %v325_v38 = vld [vmem:[%s3246_s24 + $0x6c] sm:$0xf]  ;;  %v748_v48 = vsel %vm3442_vm7, %v553_v40, %v747_v37  ;;  %v589_v8 = vshrl.u32 %v328_v5, 16  ;;  %v592_v9 = vshll.u32 %v328_v5, 16 }
  0x6e   : > { %714 = vst [vmem:[#allocation2 + $0x68] sm:$0x1] %v713_v43  ;;  %v563_v42 = vshrl.u32 %v325_v38, 16  ;;  %v744_v43 = vsel %vm3405_vm5, %v543_v27, %v743_v28  ;;  %v566_v46 = vshll.u32 %v325_v38, 16  ;;  %v751_v56 = vsel %vm3405_vm5, %v560_v49, %v750_v45  ;;  %v761_v0 = vld [vmem:[#allocation2 + $0xbc] sm:$0x1] }
  0x6f   : > { %717 = vst [vmem:[#allocation2 + $0x6c] sm:$0xf] %v716_v54  ;;  %v572_v54 = vshrl.u32 %v326_v50, 16  ;;  %v582_v7 = vrot.slane %v580_v62, 7  ;;  %v329_v11 = vld [vmem:[%s3246_s24 + $0x7c] sm:$0xf] }
  0x70   : > { %718 = vst.msk [vmem:[#allocation2 + $0x70] sm:$0xf] %vm242_vm0, %v484_v55  ;;  %v565_v53 = vrot.slane %v563_v42, 7  ;;  %v575_v55 = vshll.u32 %v326_v50, 16  ;;  %v764_v16 = vld [vmem:[#allocation2 + $0xc0] sm:$0xf] }
  0x71   : > { %721 = vst [vmem:[#allocation2 + $0x74] sm:$0x1] %v720_v63  ;;  %v574_v61 = vrot.slane %v572_v54, 7  ;;  %v757_v63 = vld [vmem:[#allocation2 + $0xb4] sm:$0xf]  ;;  %v587_v13 = vrot.slane %v582_v7, 4 }
  0x72   : > { %724 = vst [vmem:[#allocation2 + $0x78] sm:$0xf] %v723_v1  ;;  %v568_v59 = vor.u32 %v566_v46, %v565_v53  ;;  %v570_v60 = vrot.slane %v565_v53, 4  ;;  %v583_v1 = vshll.u32 %v327_v58, 16  ;;  %v600_v17 = vshll.u32 %v329_v11, 16 }
  0x73   : > { %725 = vst.msk [vmem:[#allocation2 + $0x7c] sm:$0xf] %vm242_vm0, %v501_v4  ;;  %v577_v4 = vor.u32 %v575_v55, %v574_v61  ;;  %v578_v6 = vrot.slane %v574_v61, 4  ;;  %v762_v19 = vsel %vm3442_vm7, %v587_v13, %v761_v0  ;;  %v768_v24 = vld [vmem:[#allocation2 + $0xc8] sm:$0x1] }
  0x74   : > { %728 = vst [vmem:[#allocation2 + $0x80] sm:$0x1] %v727_v14  ;;  %v569_v2 = vsel %vm3427_vm6, %v561_v52, %v568_v59  ;;  %v755_v3 = vsel %vm3442_vm7, %v570_v60, %v754_v57  ;;  %v585_v12 = vor.u32 %v583_v1, %v582_v7  ;;  %v591_v14 = vrot.slane %v589_v8, 7 }
  0x75   : > { %731 = vst [vmem:[#allocation2 + $0x84] sm:$0xf] %v730_v15  ;;  %v758_v10 = vsel %vm3405_vm5, %v577_v4, %v757_v63  ;;  %v597_v15 = vshrl.u32 %v329_v11, 16 }
  0x76   : > { %732 = vst.msk [vmem:[#allocation2 + $0x88] sm:$0xf] %vm242_vm0, %v518_v22  ;;  %v586_v18 = vsel %vm3427_vm6, %v578_v6, %v585_v12  ;;  %v594_v20 = vor.u32 %v592_v9, %v591_v14  ;;  %v595_v21 = vrot.slane %v591_v14, 4 }
  0x77   : > { %735 = vst [vmem:[#allocation2 + $0x8c] sm:$0x1] %v734_v25  ;;  %v599_v22 = vrot.slane %v597_v15, 7 }
  0x78   : > { %738 = vst [vmem:[#allocation2 + $0x90] sm:$0xf] %v737_v26  ;;  %v765_v23 = vsel %vm3405_vm5, %v594_v20, %v764_v16 }
  0x79   : > { %739 = vst.msk [vmem:[#allocation2 + $0x94] sm:$0xf] %vm242_vm0, %v535_v34  ;;  %v602_v25 = vor.u32 %v600_v17, %v599_v22  ;;  %v604_v26 = vrot.slane %v599_v22, 4 }
  0x7a   : > { %742 = vst [vmem:[#allocation2 + $0x98] sm:$0x1] %v741_v36 }
  0x7b   : > { %745 = vst [vmem:[#allocation2 + $0x9c] sm:$0xf] %v744_v43  ;;  %v603_v27 = vsel %vm3427_vm6, %v595_v21, %v602_v25  ;;  %v769_v28 = vsel %vm3442_vm7, %v604_v26, %v768_v24 }
  0x7c   : > { %746 = vst.msk [vmem:[#allocation2 + $0xa0] sm:$0xf] %vm242_vm0, %v552_v47 }
  0x7d   : > { %749 = vst [vmem:[#allocation2 + $0xa4] sm:$0x1] %v748_v48 }
  0x7e   : > { %752 = vst [vmem:[#allocation2 + $0xa8] sm:$0xf] %v751_v56 }
  0x7f   : > { %753 = vst.msk [vmem:[#allocation2 + $0xac] sm:$0xf] %vm242_vm0, %v569_v2 }
  0x80   : > { %756 = vst [vmem:[#allocation2 + $0xb0] sm:$0x1] %v755_v3 }
  0x81   : > { %759 = vst [vmem:[#allocation2 + $0xb4] sm:$0xf] %v758_v10 }
  0x82   : > { %760 = vst.msk [vmem:[#allocation2 + $0xb8] sm:$0xf] %vm242_vm0, %v586_v18 }
  0x83   : > { %763 = vst [vmem:[#allocation2 + $0xbc] sm:$0x1] %v762_v19 }
  0x84   : > { %766 = vst [vmem:[#allocation2 + $0xc0] sm:$0xf] %v765_v23 }
  0x85   : > { %767 = vst.msk [vmem:[#allocation2 + $0xc4] sm:$0xf] %vm242_vm0, %v603_v27 }
  0x86   : > { %770 = vst [vmem:[#allocation2 + $0xc8] sm:$0x1] %v769_v28 }
  0x87 PF: > { %s2878_s26 = smul.u32 96, %s3113_s18  ;;  %vm1026_vm8 = vcmask 1042432   ;;  %vm1027_vm9 = vcmask 1046532   ;;  %vm799_vm11 = vsmask.f32 3328  ;;  %s3132_s10 = smov 12  }
  0x88   : > { %vm3634_vm10 = vmor %vm1026_vm8, %vm1027_vm9  ;;  %vm800_vm12 = vsmask.f32 7440  ;;  %s3133_s11 = smov 8   ;;  %s3134_s12 = smov 4   ;;  %vm2069_vm14 = vcmask 31744   ;;  %vm2094_vm15 = vcmask 64512  }
  0x89   : > { %s3638_s9 = scalar_lea.vmem [#allocation2], %s2878_s26  ;;  %vm3656_vm13 = vmor %vm799_vm11, %vm800_vm12  ;;  %s3135_s13 = smov 16   ;;  %vm2111_vm0 = vcmask 97280   ;;  %vm2254_vm1 = vcmask 1041408   ;;  %vm2128_vm2 = vcmask 130048   ;;  %vm2145_vm3 = vcmask 162816  }
  0x8a   : > { %s3136_s14 = smov 24   ;;  %s3137_s23 = smov 20   ;;  %vm2162_vm4 = vcmask 195584   ;;  %vm2179_vm5 = vcmask 228352   ;;  %vm2196_vm6 = vcmask 261120   ;;  %vm2237_vm7 = vcmask 293888  }
  0x8b   : > { %s3138_s24 = smov 28   ;;  %s3139_s27 = smov 32   ;;  %vm2371_vm9 = vcmask 60416  }
  0x8c   : > { %s4456_s6 = sand.u32 1, %s3105_s16  }
  0x8d   : > { %v784_v44 = vld [vmem:[%s3638_s9 + $0x34] sm:$0xf]  ;;  %v795_v51 = vld [vmem:[%s3638_s9 + $0x38] sm:$0x1]  ;;  %v998_v29 = vld [vmem:[%s3638_s9 + $0x30] sm:$0xe] }
  0x8e   : > { %v2657_v30 = vrot.slane %v998_v29, 9  ;;  %v1059_v31 = vrot.slane %v784_v44, 5  ;;  %v1062_v32 = vrot.slane %v795_v51, 5  ;;  %v783_v33 = vld [vmem:[%s3638_s9 + $0x30] sm:$0xf]  ;;  %v908_v34 = vshll.u32 %v784_v44, 16 }
  0x8f   : > { %v899_v36 = vshrl.u32 %v783_v33, 16  ;;  %v902_v37 = vshll.u32 %v783_v33, 16  ;;  %v912_v38 = vshrl.u32 %v784_v44, 16  ;;  %v918_v39 = vshll.u32 %v795_v51, 16  ;;  %v788_v40 = vld [vmem:[%s3638_s9 + $0x4c] sm:$0xf] }
  0x90   : > { %v1060_v41 = vsel %vm3634_vm10, %v2657_v30, %v1059_v31  ;;  %v1061_v42 = vrot.slane %v1059_v31, 4  ;;  %v910_v43 = vrot.slane %v908_v34, 5  ;;  %v797_v45 = vld [vmem:[%s3638_s9 + $0x50] sm:$0x1]  ;;  %v1000_v46 = vld [vmem:[%s3638_s9 + $0x48] sm:$0xe] }
  0x91   : > { %v1781_v47 = vunpack.c.l.b16 %v1060_v41  ;;  %v901_v48 = vrot.slane %v899_v36, 4  ;;  %v904_v49 = vrot.slane %v902_v37, 5  ;;  %v914_v50 = vrot.slane %v912_v38, 4  ;;  %v787_v52 = vld [vmem:[%s3638_s9 + $0x48] sm:$0xf]  ;;  %v2891_v53 = vld [vmem:[%s3638_s9 + $0x3c] sm:$0xff] }
  0x92   : > { %v1063_v54 = vsel %vm3634_vm10, %v1061_v42, %v1062_v32  ;;  %v920_v55 = vrot.slane %v918_v39, 5  ;;  %v2659_v56 = vrot.slane %v1000_v46, 9  ;;  %v1073_v57 = vrot.slane %v788_v40, 5  ;;  %1853 = vrot.lane.b32.xlu2 %v2891_v53, %s3132_s10  ;;  %v2675_v11 = vld [vmem:[%s3638_s9 + $0x54] sm:$0xf]  ;;  %s2488_s26 = scalar_lea.sflag [#allocation5], %s4456_s6 }
  0x93   : > { %v1782_v58 = vunpack.c.l.b16 %v1063_v54  ;;  %v905_v59 = vor.u32 %v904_v49, %v901_v48  ;;  %v915_v60 = vor.u32 %v914_v50, %v910_v43  ;;  %v1076_v61 = vrot.slane %v797_v45, 5  ;;  %v3671_v16 = vld [vmem:[%s3638_s9 + $0x58] sm:$0xf]  ;;  %v3675_v25 = vld [vmem:[%s3638_s9 + $0x5c] sm:$0x1] }
  0x94   : > { %v1074_v63 = vsel %vm3634_vm10, %v2659_v56, %v1073_v57  ;;  %v1075_v1 = vrot.slane %v1073_v57, 4  ;;  %v947_v2 = vshrl.u32 %v787_v52, 16  ;;  %v950_v3 = vshll.u32 %v787_v52, 16  ;;  %v2893_v17 = vld [vmem:[%s3638_s9 + $0x54] sm:$0xff]  ;;  %v2671_v29 = vld [vmem:[%s3638_s9 + $0x3c] sm:$0xf] }
  0x95   : > { %v1793_v4 = vpack.c.b16 %v1782_v58, %v1781_v47  ;;  %v906_v5 = vrot.slane %v905_v59, 4  ;;  %v916_v6 = vrot.slane %v915_v60, 4  ;;  %v1785_v7 = vunpack.c.l.b16 %v1074_v63  ;;  %v3681_v34 = vld [vmem:[%s3638_s9 + $0x40] sm:$0xf]  ;;  %v2693_v50 = vld [vmem:[%s3638_s9 + $0x54] sm:$0xe] }
  0x96   : > { %v1077_v8 = vsel %vm3634_vm10, %v1075_v1, %v1076_v61  ;;  %v949_v9 = vrot.slane %v947_v2, 4  ;;  %v952_v10 = vrot.slane %v950_v3, 5  ;;  %v956_v0 = vshll.u32 %v788_v40, 16 }
  0x97   : > { %1805 = vrot.lane.b32.xlu1 %v1793_v4, %s3133_s11  ;;  %v911_v12 = vsel %vm3656_vm13, %v906_v5, %v910_v43  ;;  %v921_v13 = vsel %vm3656_vm13, %v916_v6, %v920_v55  ;;  %v1786_v14 = vunpack.c.l.b16 %v1077_v8  ;;  %v960_v15 = vshrl.u32 %v788_v40, 16  ;;  %v3689_v43 = vld [vmem:[%s3638_s9 + $0x44] sm:$0x1]  ;;  %v779_v6 = vld [vmem:[%s3638_s9 + $0x18] sm:$0xf] }
  0x98   : > { %v1741_v18 = vunpack.c.l.b16 %v911_v12  ;;  %v1742_v19 = vunpack.c.l.b16 %v921_v13  ;;  %v953_v20 = vor.u32 %v952_v10, %v949_v9  ;;  %v958_v21 = vrot.slane %v956_v0, 5  ;;  %v3705_v0 = vld [vmem:[%s3638_s9 + $0x1c] sm:$0xf] }
  0x99   : > { %v1795_v22 = vpack.c.b16 %v1786_v14, %v1785_v7  ;;  %v962_v23 = vrot.slane %v960_v15, 4  ;;  %v966_v24 = vshll.u32 %v797_v45, 16  ;;  %v1258_v26 = vshrl.u32 %v2675_v11, 16 }
  0x9a   : > { %v1753_v27 = vpack.c.b16 %v1742_v19, %v1741_v18  ;;  %v954_v28 = vrot.slane %v953_v20, 4  ;;  %v1261_v44 = vshll.u32 %v2675_v11, 16  ;;  %v1267_v51 = vshll.u32 %v3671_v16, 16  ;;  %1857 = vrot.lane.b32.xlu2 %v2893_v17, %s3132_s10 }
  0x9b   : > { %v963_v30 = vor.u32 %v962_v23, %v958_v21  ;;  %v968_v31 = vrot.slane %v966_v24, 5  ;;  %v1260_v32 = vrot.slane %v1258_v26, 4  ;;  %v1271_v33 = vshrl.u32 %v3671_v16, 16  ;;  %v2691_v24 = vld [vmem:[%s3638_s9 + $0x3c] sm:$0xe] }
  0x9c   : > { %1765 = vrot.lane.b32.xlu0 %v1753_v27, %s3134_s12  ;;  %v959_v36 = vsel %vm3656_vm13, %v954_v28, %v958_v21  ;;  %v1263_v37 = vrot.slane %v1261_v44, 5  ;;  %v1269_v38 = vrot.slane %v1267_v51, 5  ;;  %v1277_v39 = vshll.u32 %v3675_v25, 16  ;;  %v3714_v21 = vld [vmem:[%s3638_s9 + $0x20] sm:$0x1] }
  0x9d   : > { %v964_v40 = vrot.slane %v963_v30, 4  ;;  %v1745_v41 = vunpack.c.l.b16 %v959_v36  ;;  %v1273_v42 = vrot.slane %v1271_v33, 4  ;;  %v1210_v45 = vshrl.u32 %v2671_v29, 16 }
  0x9e   : > { %v1264_v46 = vor.u32 %v1263_v37, %v1260_v32  ;;  %v1279_v47 = vrot.slane %v1277_v39, 5  ;;  %v1213_v48 = vshll.u32 %v2671_v29, 16  ;;  %v1219_v49 = vshll.u32 %v3681_v34, 16  ;;  %v775_v37 = vld [vmem:[%s3638_s9] sm:$0xf] }
  0x9f   : > { %1809 = vrot.lane.b32.xlu1 %v1795_v22, %s3133_s11  ;;  %v969_v52 = vsel %vm3656_vm13, %v964_v40, %v968_v31  ;;  %v1274_v53 = vor.u32 %v1273_v42, %v1269_v38  ;;  %v1212_v54 = vrot.slane %v1210_v45, 4  ;;  %v1223_v55 = vshrl.u32 %v3681_v34, 16  ;;  %v776_v42 = vld [vmem:[%s3638_s9 + $0x4] sm:$0xf] }
  0xa0   : > { %v1746_v56 = vunpack.c.l.b16 %v969_v52  ;;  %v1265_v57 = vrot.slane %v1264_v46, 4  ;;  %v1215_v58 = vrot.slane %v1213_v48, 5  ;;  %v1221_v59 = vrot.slane %v1219_v49, 5  ;;  %v2899_v49 = vld [vmem:[%s3638_s9 + $0x48] sm:$0xff] }
  0xa1   : > { %v1275_v60 = vrot.slane %v1274_v53, 4  ;;  %v1225_v61 = vrot.slane %v1223_v55, 4  ;;  %v1229_v63 = vshll.u32 %v3689_v43, 16  ;;  %v2701_v1 = vrot.slane %v2693_v50, 9  ;;  %v791_v55 = vld [vmem:[%s3638_s9 + $0x8] sm:$0x1] }
  0xa2   : > { %v1755_v2 = vpack.c.b16 %v1746_v56, %v1745_v41  ;;  %v1270_v3 = vsel %vm3656_vm13, %v1265_v57, %v1269_v38  ;;  %v1216_v4 = vor.u32 %v1215_v58, %v1212_v54  ;;  %v1381_v5 = vrot.slane %v3671_v16, 5  ;;  %v994_v58 = vld [vmem:[%s3638_s9] sm:$0xe] }
  0xa3   : > { %v1280_v7 = vsel %vm3656_vm13, %v1275_v60, %v1279_v47  ;;  %v1873_v8 = vunpack.c.l.b16 %v1270_v3  ;;  %v1226_v9 = vor.u32 %v1225_v61, %v1221_v59  ;;  %v1231_v10 = vrot.slane %v1229_v63, 5 }
  0xa4   : > { %1769 = vrot.lane.b32.xlu0 %v1755_v2, %s3134_s12  ;;  %v1874_v11 = vunpack.c.l.b16 %v1280_v7  ;;  %v1217_v12 = vrot.slane %v1216_v4, 4  ;;  %v1382_v13 = vsel %vm3634_vm10, %v2701_v1, %v1381_v5  ;;  %v1383_v14 = vrot.slane %v1381_v5, 4  ;;  %v2717_v5 = vld [vmem:[%s3638_s9 + $0x60] sm:$0xf] }
  0xa5   : > { %v1227_v15 = vrot.slane %v1226_v9, 4  ;;  %v1384_v16 = vrot.slane %v3675_v25, 5  ;;  %v1913_v17 = vunpack.c.l.b16 %v1382_v13  ;;  %v851_v18 = vshrl.u32 %v779_v6, 16 }
  0xa6   : > { %v1883_v19 = vpack.c.b16 %v1874_v11, %v1873_v8  ;;  %v1222_v20 = vsel %vm3656_vm13, %v1217_v12, %v1221_v59  ;;  %v854_v22 = vshll.u32 %v779_v6, 16  ;;  %v860_v23 = vshll.u32 %v3705_v0, 16 }
  0xa7   : > { %v1232_v26 = vsel %vm3656_vm13, %v1227_v15, %v1231_v10  ;;  %v1869_v27 = vunpack.c.l.b16 %v1222_v20  ;;  %v1385_v25 = vsel %vm3634_vm10, %v1383_v14, %v1384_v16  ;;  %v853_v28 = vrot.slane %v851_v18, 4 }
  0xa8   : > { %1897 = vrot.lane.b32.xlu1 %v1883_v19, %s3135_s13  ;;  %v1870_v44 = vunpack.c.l.b16 %v1232_v26  ;;  %v1914_v51 = vunpack.c.l.b16 %v1385_v25  ;;  %v856_v29 = vrot.slane %v854_v22, 5  ;;  %v862_v30 = vrot.slane %v860_v23, 5  ;;  %v2718_v22 = vld [vmem:[%s3638_s9 + $0x64] sm:$0xf]  ;;  %v2727_v25 = vld [vmem:[%s3638_s9 + $0x68] sm:$0x1] }
  0xa9   : > { %v864_v31 = vshrl.u32 %v3705_v0, 16  ;;  %v870_v32 = vshll.u32 %v3714_v21, 16  ;;  %v2699_v33 = vrot.slane %v2691_v24, 9  ;;  %v1367_v36 = vrot.slane %v3681_v34, 5 }
  0xaa   : > { %v1881_v38 = vpack.c.b16 %v1870_v44, %v1869_v27  ;;  %v1923_v39 = vpack.c.b16 %v1914_v51, %v1913_v17  ;;  %v857_v40 = vor.u32 %v856_v29, %v853_v28  ;;  %v1370_v41 = vrot.slane %v3689_v43, 5  ;;  %v2735_v44 = vld [vmem:[%s3638_s9 + $0x60] sm:$0xe] }
  0xab   : > { %v866_v45 = vrot.slane %v864_v31, 4  ;;  %v872_v46 = vrot.slane %v870_v32, 5  ;;  %v1368_v47 = vsel %vm3634_vm10, %v2699_v33, %v1367_v36  ;;  %v1369_v48 = vrot.slane %v1367_v36, 4  ;;  %v2901_v36 = vld [vmem:[%s3638_s9 + $0x60] sm:$0xff] }
  0xac   : > { %1893 = vrot.lane.b32.xlu0 %v1881_v38, %s3135_s13  ;;  %v858_v50 = vrot.slane %v857_v40, 4  ;;  %v1909_v34 = vunpack.c.l.b16 %v1368_v47  ;;  %v803_v52 = vshrl.u32 %v775_v37, 16  ;;  %v806_v53 = vshll.u32 %v775_v37, 16 }
  0xad   : > { %v867_v54 = vor.u32 %v866_v45, %v862_v30  ;;  %v1371_v43 = vsel %vm3634_vm10, %v1369_v48, %v1370_v41  ;;  %v812_v56 = vshll.u32 %v776_v42, 16  ;;  %v816_v57 = vshrl.u32 %v776_v42, 16  ;;  %v2713_v45 = vld [vmem:[%s3638_s9 + $0x48] sm:$0xf] }
  0xae   : > { %v863_v59 = vsel %vm3656_vm13, %v858_v50, %v862_v30  ;;  %v1910_v60 = vunpack.c.l.b16 %v1371_v43  ;;  %v805_v61 = vrot.slane %v803_v52, 4  ;;  %v808_v63 = vrot.slane %v806_v53, 5  ;;  %v2714_v50 = vld [vmem:[%s3638_s9 + $0x4c] sm:$0xf] }
  0xaf   : > { %v868_v1 = vrot.slane %v867_v54, 4  ;;  %v1737_v2 = vunpack.c.l.b16 %v863_v59  ;;  %v814_v3 = vrot.slane %v812_v56, 5  ;;  %v818_v4 = vrot.slane %v816_v57, 4  ;;  %v2725_v57 = vld [vmem:[%s3638_s9 + $0x50] sm:$0x1] }
  0xb0   : > { %1981 = vrot.lane.b32.xlu1 %v2899_v49, %s3136_s14  ;;  %v1921_v6 = vpack.c.b16 %v1910_v60, %v1909_v34  ;;  %v809_v7 = vor.u32 %v808_v63, %v805_v61  ;;  %v822_v8 = vshll.u32 %v791_v55, 16  ;;  %v2653_v9 = vrot.slane %v994_v58, 9 }
  0xb1   : > { %v873_v10 = vsel %vm3656_vm13, %v868_v1, %v872_v46  ;;  %v819_v11 = vor.u32 %v818_v4, %v814_v3  ;;  %v1031_v12 = vrot.slane %v776_v42, 5  ;;  %v1034_v13 = vrot.slane %v791_v55, 5  ;;  %v2733_v1 = vld [vmem:[%s3638_s9 + $0x48] sm:$0xe] }
  0xb2   : > { %v1738_v14 = vunpack.c.l.b16 %v873_v10  ;;  %1933 = vrot.lane.b32.xlu2 %v1921_v6, %s3137_s23  ;;  %v810_v15 = vrot.slane %v809_v7, 4  ;;  %v824_v16 = vrot.slane %v822_v8, 5  ;;  %v1566_v17 = vshrl.u32 %v2717_v5, 16 }
  0xb3   : > { %v820_v18 = vrot.slane %v819_v11, 4  ;;  %v1032_v19 = vsel %vm3634_vm10, %v2653_v9, %v1031_v12  ;;  %v1033_v20 = vrot.slane %v1031_v12, 4  ;;  %v1569_v23 = vshll.u32 %v2717_v5, 16 }
  0xb4   : > { %1937 = vrot.lane.b32.xlu0 %v1923_v39, %s3137_s23  ;;  %v1751_v24 = vpack.c.b16 %v1738_v14, %v1737_v2  ;;  %v815_v26 = vsel %vm3656_vm13, %v810_v15, %v814_v3  ;;  %v1773_v27 = vunpack.c.l.b16 %v1032_v19  ;;  %v1568_v28 = vrot.slane %v1566_v17, 4  ;;  %v3774_v19 = vld [vmem:[%s3638_s9 + $0x10] sm:$0xf] }
  0xb5   : > { %v825_v51 = vsel %vm3656_vm13, %v820_v18, %v824_v16  ;;  %v1733_v29 = vunpack.c.l.b16 %v815_v26  ;;  %v1035_v30 = vsel %vm3634_vm10, %v1033_v20, %v1034_v13  ;;  %v1571_v31 = vrot.slane %v1569_v23, 5  ;;  %v2663_v18 = vld [vmem:[%s3638_s9 + $0xc] sm:$0xf] }
  0xb6   : > { %v1734_v32 = vunpack.c.l.b16 %v825_v51  ;;  %v1774_v33 = vunpack.c.l.b16 %v1035_v30  ;;  %v1575_v37 = vshll.u32 %v2718_v22, 16  ;;  %v1579_v38 = vshrl.u32 %v2718_v22, 16  ;;  %v3782_v51 = vld [vmem:[%s3638_s9 + $0x14] sm:$0x1] }
  0xb7   : > { %v1572_v39 = vor.u32 %v1571_v31, %v1568_v28  ;;  %v1585_v40 = vshll.u32 %v2727_v25, 16  ;;  %v2743_v41 = vrot.slane %v2735_v44, 9  ;;  %v1689_v42 = vrot.slane %v2718_v22, 5 }
  0xb8   : > { %1761 = vrot.lane.b32.xlu1 %v1751_v24, %s3134_s12  ;;  %v1749_v46 = vpack.c.b16 %v1734_v32, %v1733_v29  ;;  %v1789_v47 = vpack.c.b16 %v1774_v33, %v1773_v27  ;;  %v1577_v48 = vrot.slane %v1575_v37, 5  ;;  %v1581_v49 = vrot.slane %v1579_v38, 4  ;;  %v996_v38 = vld [vmem:[%s3638_s9 + $0x18] sm:$0xe] }
  0xb9   : > { %v1573_v34 = vrot.slane %v1572_v39, 4  ;;  %v1587_v52 = vrot.slane %v1585_v40, 5  ;;  %v1690_v53 = vsel %vm3634_vm10, %v2743_v41, %v1689_v42  ;;  %v1691_v54 = vrot.slane %v1689_v42, 4 }
  0xba   : > { %1985 = vrot.lane.b32.xlu2 %v2901_v36, %s3136_s14  ;;  %v1582_v43 = vor.u32 %v1581_v49, %v1577_v48  ;;  %v1692_v55 = vrot.slane %v2727_v25, 5  ;;  %v2041_v56 = vunpack.c.l.b16 %v1690_v53  ;;  %v1518_v58 = vshrl.u32 %v2713_v45, 16 }
  0xbb   : > { %v1578_v59 = vsel %vm3656_vm13, %v1573_v34, %v1577_v48  ;;  %v1521_v60 = vshll.u32 %v2713_v45, 16  ;;  %v1527_v61 = vshll.u32 %v2714_v50, 16  ;;  %v1531_v63 = vshrl.u32 %v2714_v50, 16  ;;  %v2689_v45 = vld [vmem:[%s3638_s9 + $0x24] sm:$0xe] }
  0xbc   : > { %1757 = vrot.lane.b32.xlu0 %v1749_v46, %s3134_s12  ;;  %v1583_v2 = vrot.slane %v1582_v43, 4  ;;  %v2001_v3 = vunpack.c.l.b16 %v1578_v59  ;;  %v1693_v4 = vsel %vm3634_vm10, %v1691_v54, %v1692_v55  ;;  %v1520_v5 = vrot.slane %v1518_v58, 4  ;;  %v3799_v43 = vld [vmem:[%s3638_s9 + $0x2c] sm:$0x1]  ;;  %v2687_v55 = vld [vmem:[%s3638_s9 + $0xc] sm:$0xe] }
  0xbd   : > { %v2042_v6 = vunpack.c.l.b16 %v1693_v4  ;;  %v1523_v7 = vrot.slane %v1521_v60, 5  ;;  %v1529_v8 = vrot.slane %v1527_v61, 5  ;;  %v1533_v9 = vrot.slane %v1531_v63, 4 }
  0xbe   : > { %v1588_v10 = vsel %vm3656_vm13, %v1583_v2, %v1587_v52  ;;  %v1537_v11 = vshll.u32 %v2725_v57, 16  ;;  %v2741_v12 = vrot.slane %v2733_v1, 9  ;;  %v1675_v13 = vrot.slane %v2714_v50, 5  ;;  %v3795_v50 = vld [vmem:[%s3638_s9 + $0x28] sm:$0xf] }
  0xbf   : > { %v2002_v14 = vunpack.c.l.b16 %v1588_v10  ;;  %v2051_v15 = vpack.c.b16 %v2042_v6, %v2041_v56  ;;  %v1524_v16 = vor.u32 %v1523_v7, %v1520_v5  ;;  %v1534_v17 = vor.u32 %v1533_v9, %v1529_v8 }
  0xc0   : > { %1797 = vrot.lane.b32.xlu1 %v1789_v47, %s3133_s11  ;;  %v1539_v20 = vrot.slane %v1537_v11, 5  ;;  %v1676_v22 = vsel %vm3634_vm10, %v2741_v12, %v1675_v13  ;;  %v1677_v23 = vrot.slane %v1675_v13, 4  ;;  %v1678_v24 = vrot.slane %v2725_v57, 5  ;;  %v3819_v13 = vld [vmem:[%s3638_s9 + $0x1c] sm:$0xf] }
  0xc1   : > { %v2011_v26 = vpack.c.b16 %v2002_v14, %v2001_v3  ;;  %v1525_v27 = vrot.slane %v1524_v16, 4  ;;  %v1535_v25 = vrot.slane %v1534_v17, 4  ;;  %v2037_v28 = vunpack.c.l.b16 %v1676_v22  ;;  %v3827_v22 = vld [vmem:[%s3638_s9 + $0x20] sm:$0x1] }
  0xc2   : > { %v1679_v44 = vsel %vm3634_vm10, %v1677_v23, %v1678_v24  ;;  %v1114_v29 = vshrl.u32 %v2663_v18, 16  ;;  %v1117_v30 = vshll.u32 %v2663_v18, 16  ;;  %v1123_v31 = vshll.u32 %v3774_v19, 16 }
  0xc3   : > { %v1530_v32 = vsel %vm3656_vm13, %v1525_v27, %v1529_v8  ;;  %v1540_v33 = vsel %vm3656_vm13, %v1535_v25, %v1539_v20  ;;  %v2038_v36 = vunpack.c.l.b16 %v1679_v44  ;;  %v1127_v37 = vshrl.u32 %v3774_v19, 16  ;;  %v2705_v8 = vld [vmem:[%s3638_s9 + $0x18] sm:$0xf]  ;;  %v2667_v44 = vld [vmem:[%s3638_s9 + $0x24] sm:$0xf] }
  0xc4   : > { %2025 = vrot.lane.b32.xlu0 %v2011_v26, %s3138_s24  ;;  %v1997_v39 = vunpack.c.l.b16 %v1530_v32  ;;  %v1998_v40 = vunpack.c.l.b16 %v1540_v33  ;;  %v1116_v41 = vrot.slane %v1114_v29, 4  ;;  %v1119_v42 = vrot.slane %v1117_v30, 5 }
  0xc5   : > { %v2049_v46 = vpack.c.b16 %v2038_v36, %v2037_v28  ;;  %v1125_v47 = vrot.slane %v1123_v31, 5  ;;  %v1129_v48 = vrot.slane %v1127_v37, 4  ;;  %v1133_v49 = vshll.u32 %v3782_v51, 16 }
  0xc6   : > { %v2009_v34 = vpack.c.b16 %v1998_v40, %v1997_v39  ;;  %v1120_v52 = vor.u32 %v1119_v42, %v1116_v41  ;;  %v2655_v53 = vrot.slane %v996_v38, 9  ;;  %v1045_v54 = vrot.slane %v3705_v0, 5  ;;  %v3841_v41 = vld [vmem:[%s3638_s9 + $0x34] sm:$0xf] }
  0xc7   : > { %v1130_v56 = vor.u32 %v1129_v48, %v1125_v47  ;;  %v1135_v57 = vrot.slane %v1133_v49, 5  ;;  %v1048_v58 = vrot.slane %v3714_v21, 5  ;;  %v2697_v59 = vrot.slane %v2689_v45, 9  ;;  %v2731_v48 = vld [vmem:[%s3638_s9 + $0x30] sm:$0xe] }
  0xc8   : > { %2065 = vrot.lane.b32.xlu1 %v2051_v15, %s3139_s27  ;;  %2021 = vrot.lane.b32.xlu2 %v2009_v34, %s3138_s24  ;;  %v1121_v60 = vrot.slane %v1120_v52, 4  ;;  %v1046_v61 = vsel %vm3634_vm10, %v2655_v53, %v1045_v54  ;;  %v1047_v0 = vrot.slane %v1045_v54, 4  ;;  %v1353_v63 = vrot.slane %v3795_v50, 5  ;;  %v2887_v54 = vld [vmem:[%s3638_s9 + $0xc] sm:$0xff] }
  0xc9   : > { %v1131_v1 = vrot.slane %v1130_v56, 4  ;;  %v1777_v2 = vunpack.c.l.b16 %v1046_v61  ;;  %v1356_v3 = vrot.slane %v3799_v43, 5  ;;  %v2695_v21 = vrot.slane %v2687_v55, 9 }
  0xca   : > { %v1126_v4 = vsel %vm3656_vm13, %v1121_v60, %v1125_v47  ;;  %v1049_v5 = vsel %vm3634_vm10, %v1047_v0, %v1048_v58  ;;  %v1354_v6 = vsel %vm3634_vm10, %v2697_v59, %v1353_v63  ;;  %v1355_v7 = vrot.slane %v1353_v63, 4  ;;  %v3850_v59 = vld [vmem:[%s3638_s9 + $0x38] sm:$0x1]  ;;  %v2729_v63 = vld [vmem:[%s3638_s9 + $0x18] sm:$0xe] }
  0xcb   : > { %v1136_v9 = vsel %vm3656_vm13, %v1131_v1, %v1135_v57  ;;  %v1861_v10 = vunpack.c.l.b16 %v1126_v4  ;;  %v1778_v11 = vunpack.c.l.b16 %v1049_v5  ;;  %v1905_v12 = vunpack.c.l.b16 %v1354_v6 }
  0xcc   : > { %2061 = vrot.lane.b32.xlu0 %v2049_v46, %s3139_s27  ;;  %v1862_v14 = vunpack.c.l.b16 %v1136_v9  ;;  %v1357_v15 = vsel %vm3634_vm10, %v1355_v7, %v1356_v3  ;;  %v1339_v16 = vrot.slane %v3774_v19, 5  ;;  %v1342_v17 = vrot.slane %v3782_v51, 5  ;;  %v2889_v51 = vld [vmem:[%s3638_s9 + $0x24] sm:$0xff] }
  0xcd   : > { %v1791_v18 = vpack.c.b16 %v1778_v11, %v1777_v2  ;;  %v1906_v20 = vunpack.c.l.b16 %v1357_v15  ;;  %v1422_v23 = vshrl.u32 %v2705_v8, 16  ;;  %v1425_v24 = vshll.u32 %v2705_v8, 16 }
  0xce   : > { %v1877_v26 = vpack.c.b16 %v1862_v14, %v1861_v10  ;;  %v1340_v27 = vsel %vm3634_vm10, %v2695_v21, %v1339_v16  ;;  %v1341_v25 = vrot.slane %v1339_v16, 4  ;;  %v1431_v28 = vshll.u32 %v3819_v13, 16  ;;  %v3869_v16 = vld [vmem:[%s3638_s9 + $0x40] sm:$0xf] }
  0xcf   : > { %v1919_v29 = vpack.c.b16 %v1906_v20, %v1905_v12  ;;  %v1424_v19 = vrot.slane %v1422_v23, 4  ;;  %v1427_v30 = vrot.slane %v1425_v24, 5  ;;  %v1435_v33 = vshrl.u32 %v3819_v13, 16 }
  0xd0   : > { %1885 = vrot.lane.b32.xlu1 %v1877_v26, %s3135_s13  ;;  %1801 = vrot.lane.b32.xlu2 %v1791_v18, %s3133_s11  ;;  %v1343_v31 = vsel %vm3634_vm10, %v1341_v25, %v1342_v17  ;;  %v1433_v32 = vrot.slane %v1431_v28, 5  ;;  %v1441_v36 = vshll.u32 %v3827_v22, 16  ;;  %v1901_v37 = vunpack.c.l.b16 %v1340_v27  ;;  %v999_v17 = vld [vmem:[%s3638_s9 + $0x3c] sm:$0xe]  ;;  %v3876_v26 = vld [vmem:[%s3638_s9 + $0x44] sm:$0x1] }
  0xd1   : > { %v1428_v38 = vor.u32 %v1427_v30, %v1424_v19  ;;  %v1162_v39 = vshrl.u32 %v2667_v44, 16  ;;  %v1165_v40 = vshll.u32 %v2667_v44, 16  ;;  %v1902_v42 = vunpack.c.l.b16 %v1343_v31  ;;  %v2709_v27 = vld [vmem:[%s3638_s9 + $0x30] sm:$0xf] }
  0xd2   : > { %v1437_v45 = vrot.slane %v1435_v33, 4  ;;  %v1171_v46 = vshll.u32 %v3795_v50, 16  ;;  %v1175_v47 = vshrl.u32 %v3795_v50, 16  ;;  %v1443_v34 = vrot.slane %v1441_v36, 5 }
  0xd3   : > { %v1429_v49 = vrot.slane %v1428_v38, 4  ;;  %v1164_v52 = vrot.slane %v1162_v39, 4  ;;  %v1167_v53 = vrot.slane %v1165_v40, 5  ;;  %v1181_v58 = vshll.u32 %v3799_v43, 16  ;;  %v789_v40 = vld [vmem:[%s3638_s9 + $0x54] sm:$0xf] }
  0xd4   : > { %1849 = vrot.lane.b32.xlu0 %v2889_v51, %s3132_s10  ;;  %v1438_v55 = vor.u32 %v1437_v45, %v1433_v32  ;;  %v1173_v56 = vrot.slane %v1171_v46, 5  ;;  %v1177_v57 = vrot.slane %v1175_v47, 4  ;;  %v2739_v61 = vrot.slane %v2731_v48, 9  ;;  %v3892_v48 = vld [vmem:[%s3638_s9 + $0x58] sm:$0xf] }
  0xd5   : > { %v1434_v60 = vsel %vm3656_vm13, %v1429_v49, %v1433_v32  ;;  %v1168_v50 = vor.u32 %v1167_v53, %v1164_v52  ;;  %v1661_v0 = vrot.slane %v3841_v41, 5  ;;  %v1917_v1 = vpack.c.b16 %v1902_v42, %v1901_v37  ;;  %v2897_v49 = vld [vmem:[%s3638_s9 + $0x30] sm:$0xff] }
  0xd6   : > { %v1439_v2 = vrot.slane %v1438_v55, 4  ;;  %v1178_v3 = vor.u32 %v1177_v57, %v1173_v56  ;;  %v1183_v21 = vrot.slane %v1181_v58, 5  ;;  %v1664_v6 = vrot.slane %v3850_v59, 5 }
  0xd7   : > { %v1169_v4 = vrot.slane %v1168_v50, 4  ;;  %v1662_v43 = vsel %vm3634_vm10, %v2739_v61, %v1661_v0  ;;  %v1663_v5 = vrot.slane %v1661_v0, 4  ;;  %v1989_v8 = vunpack.c.l.b16 %v1434_v60 }
  0xd8   : > { %1929 = vrot.lane.b32.xlu1 %v1919_v29, %s3137_s23  ;;  %1845 = vrot.lane.b32.xlu2 %v2887_v54, %s3132_s10  ;;  %v1444_v7 = vsel %vm3656_vm13, %v1439_v2, %v1443_v34  ;;  %v1179_v9 = vrot.slane %v1178_v3, 4  ;;  %v2737_v10 = vrot.slane %v2729_v63, 9  ;;  %v1647_v15 = vrot.slane %v3819_v13, 5  ;;  %v785_v63 = vld [vmem:[%s3638_s9 + $0x3c] sm:$0xf] }
  0xd9   : > { %v1990_v11 = vunpack.c.l.b16 %v1444_v7  ;;  %v1174_v12 = vsel %vm3656_vm13, %v1169_v4, %v1173_v56  ;;  %v1665_v14 = vsel %vm3634_vm10, %v1663_v5, %v1664_v6  ;;  %v2033_v23 = vunpack.c.l.b16 %v1662_v43 }
  0xda   : > { %v1184_v18 = vsel %vm3656_vm13, %v1179_v9, %v1183_v21  ;;  %v1865_v20 = vunpack.c.l.b16 %v1174_v12  ;;  %v1650_v24 = vrot.slane %v3827_v22, 5  ;;  %v2034_v28 = vunpack.c.l.b16 %v1665_v14 }
  0xdb   : > { %v1866_v25 = vunpack.c.l.b16 %v1184_v18  ;;  %v1648_v44 = vsel %vm3634_vm10, %v2737_v10, %v1647_v15  ;;  %v1649_v13 = vrot.slane %v1647_v15, 4  ;;  %v2005_v29 = vpack.c.b16 %v1990_v11, %v1989_v8 }
  0xdc   : > { %1925 = vrot.lane.b32.xlu0 %v1917_v1, %s3137_s23  ;;  %v2029_v19 = vunpack.c.l.b16 %v1648_v44  ;;  %v2658_v30 = vrot.slane %v999_v17, 9  ;;  %v1066_v51 = vrot.slane %v3869_v16, 5  ;;  %v1069_v32 = vrot.slane %v3876_v26, 5  ;;  %v2692_v17 = vld [vmem:[%s3638_s9 + $0x48] sm:$0xe] }
  0xdd   : > { %v1879_v31 = vpack.c.b16 %v1866_v25, %v1865_v20  ;;  %v1651_v22 = vsel %vm3634_vm10, %v1649_v13, %v1650_v24  ;;  %v1470_v33 = vshrl.u32 %v2709_v27, 16  ;;  %v1473_v39 = vshll.u32 %v2709_v27, 16  ;;  %v3916_v27 = vld [vmem:[%s3638_s9 + $0x4c] sm:$0xf] }
  0xde   : > { %v2030_v36 = vunpack.c.l.b16 %v1651_v22  ;;  %v1067_v37 = vsel %vm3634_vm10, %v2658_v30, %v1066_v51  ;;  %v1068_v38 = vrot.slane %v1066_v51, 4  ;;  %v2047_v42 = vpack.c.b16 %v2034_v28, %v2033_v23 }
  0xdf   : > { %v1472_v45 = vrot.slane %v1470_v33, 4  ;;  %v1479_v46 = vshll.u32 %v3841_v41, 16  ;;  %v1483_v47 = vshrl.u32 %v3841_v41, 16  ;;  %v1783_v52 = vunpack.c.l.b16 %v1067_v37  ;;  %v3901_v41 = vld [vmem:[%s3638_s9 + $0x5c] sm:$0x1] }
  0xe0   : > { %2013 = vrot.lane.b32.xlu1 %v2005_v29, %s3138_s24  ;;  %1889 = vrot.lane.b32.xlu2 %v1879_v31, %s3135_s13  ;;  %v1070_v34 = vsel %vm3634_vm10, %v1068_v38, %v1069_v32  ;;  %v1475_v53 = vrot.slane %v1473_v39, 5  ;;  %v1489_v54 = vshll.u32 %v3850_v59, 16  ;;  %v2045_v55 = vpack.c.b16 %v2030_v36, %v2029_v19  ;;  %v2895_v59 = vld [vmem:[%s3638_s9 + $0x18] sm:$0xff]  ;;  %v3925_v33 = vld [vmem:[%s3638_s9 + $0x50] sm:$0x1] }
  0xe1   : > { %v1481_v56 = vrot.slane %v1479_v46, 5  ;;  %v1485_v57 = vrot.slane %v1483_v47, 4  ;;  %v971_v58 = vshrl.u32 %v789_v40, 16  ;;  %v1784_v60 = vunpack.c.l.b16 %v1070_v34  ;;  %v1001_v37 = vld [vmem:[%s3638_s9 + $0x54] sm:$0xe] }
  0xe2   : > { %v1476_v50 = vor.u32 %v1475_v53, %v1472_v45  ;;  %v974_v61 = vshll.u32 %v789_v40, 16  ;;  %v980_v0 = vshll.u32 %v3892_v48, 16  ;;  %v1491_v2 = vrot.slane %v1489_v54, 5  ;;  %v2677_v47 = vld [vmem:[%s3638_s9 + $0x60] sm:$0xf] }
  0xe3   : > { %v1486_v1 = vor.u32 %v1485_v57, %v1481_v56  ;;  %v973_v3 = vrot.slane %v971_v58, 4  ;;  %v984_v21 = vshrl.u32 %v3892_v48, 16  ;;  %v990_v6 = vshll.u32 %v3901_v41, 16  ;;  %v3941_v58 = vld [vmem:[%s3638_s9 + $0x64] sm:$0xf] }
  0xe4   : > { %1977 = vrot.lane.b32.xlu0 %v2897_v49, %s3136_s14  ;;  %v1477_v4 = vrot.slane %v1476_v50, 4  ;;  %v976_v43 = vrot.slane %v974_v61, 5  ;;  %v982_v5 = vrot.slane %v980_v0, 5  ;;  %v923_v9 = vshrl.u32 %v785_v63, 16 }
  0xe5   : > { %v1487_v7 = vrot.slane %v1486_v1, 4  ;;  %v986_v8 = vrot.slane %v984_v21, 4  ;;  %v926_v10 = vshll.u32 %v785_v63, 16  ;;  %v992_v14 = vrot.slane %v990_v6, 5 }
  0xe6   : > { %v1482_v11 = vsel %vm3656_vm13, %v1477_v4, %v1481_v56  ;;  %v977_v12 = vor.u32 %v976_v43, %v973_v3  ;;  %v932_v15 = vshll.u32 %v3869_v16, 16  ;;  %v925_v24 = vrot.slane %v923_v9, 4  ;;  %v2673_v43 = vld [vmem:[%s3638_s9 + $0x48] sm:$0xf] }
  0xe7   : > { %v1492_v18 = vsel %vm3656_vm13, %v1487_v7, %v1491_v2  ;;  %v1993_v20 = vunpack.c.l.b16 %v1482_v11  ;;  %v987_v23 = vor.u32 %v986_v8, %v982_v5  ;;  %v928_v44 = vrot.slane %v926_v10, 5  ;;  %v3950_v2 = vld [vmem:[%s3638_s9 + $0x68] sm:$0x1] }
  0xe8   : > { %2057 = vrot.lane.b32.xlu1 %v2047_v42, %s3139_s27  ;;  %1973 = vrot.lane.b32.xlu2 %v2895_v59, %s3136_s14  ;;  %v1994_v25 = vunpack.c.l.b16 %v1492_v18  ;;  %v978_v28 = vrot.slane %v977_v12, 4  ;;  %v934_v13 = vrot.slane %v932_v15, 5  ;;  %v936_v19 = vshrl.u32 %v3869_v16, 16 }
  0xe9   : > { %v988_v29 = vrot.slane %v987_v23, 4  ;;  %v942_v30 = vshll.u32 %v3876_v26, 16  ;;  %v2700_v51 = vrot.slane %v2692_v17, 9  ;;  %v1794_v31 = vpack.c.b16 %v1784_v60, %v1783_v52 }
  0xea   : > { %v983_v22 = vsel %vm3656_vm13, %v978_v28, %v982_v5  ;;  %v929_v32 = vor.u32 %v928_v44, %v925_v24  ;;  %v1374_v36 = vrot.slane %v3916_v27, 5  ;;  %v2007_v38 = vpack.c.b16 %v1994_v25, %v1993_v20 }
  0xeb   : > { %v993_v39 = vsel %vm3656_vm13, %v988_v29, %v992_v14  ;;  %v1747_v40 = vunpack.c.l.b16 %v983_v22  ;;  %v938_v16 = vrot.slane %v936_v19, 4  ;;  %v944_v34 = vrot.slane %v942_v30, 5  ;;  %v2894_v14 = vld [vmem:[%s3638_s9 + $0x60] sm:$0xff]  ;;  %v2715_v19 = vld [vmem:[%s3638_s9 + $0x54] sm:$0xf] }
  0xec   : > { %2053 = vrot.lane.b32.xlu0 %v2045_v55, %s3139_s27  ;;  %v1748_v26 = vunpack.c.l.b16 %v993_v39  ;;  %v930_v42 = vrot.slane %v929_v32, 4  ;;  %v1375_v45 = vsel %vm3634_vm10, %v2700_v51, %v1374_v36  ;;  %v1376_v46 = vrot.slane %v1374_v36, 4  ;;  %v3967_v32 = vld [vmem:[%s3638_s9 + $0x58] sm:$0xf]  ;;  %v2892_v36 = vld [vmem:[%s3638_s9 + $0x48] sm:$0xff] }
  0xed   : > { %v939_v49 = vor.u32 %v938_v16, %v934_v13  ;;  %v1377_v52 = vrot.slane %v3925_v33, 5  ;;  %v2660_v53 = vrot.slane %v1001_v37, 9  ;;  %v1911_v56 = vunpack.c.l.b16 %v1375_v45  ;;  %v3977_v45 = vpop.permute.xlu2 %1853 }
  0xee   : > { %v935_v54 = vsel %vm3656_vm13, %v930_v42, %v934_v13  ;;  %v1080_v57 = vrot.slane %v3892_v48, 5  ;;  %v1083_v55 = vrot.slane %v3901_v41, 5  ;;  %v1756_v60 = vpack.c.b16 %v1748_v26, %v1747_v40  ;;  %v3975_v40 = vld [vmem:[%s3638_s9 + $0x5c] sm:$0x1] }
  0xef   : > { %v940_v50 = vrot.slane %v939_v49, 4  ;;  %v1378_v61 = vsel %vm3634_vm10, %v1376_v46, %v1377_v52  ;;  %v1282_v0 = vshrl.u32 %v2677_v47, 16  ;;  %v1743_v63 = vunpack.c.l.b16 %v935_v54 }
  0xf0   : > { %1807 = vrot.lane.b32.xlu1 %v1794_v31, %s3133_s11  ;;  %2017 = vrot.lane.b32.xlu2 %v2007_v38, %s3138_s24  ;;  %v1081_v1 = vsel %vm3634_vm10, %v2660_v53, %v1080_v57  ;;  %v1082_v48 = vrot.slane %v1080_v57, 4  ;;  %v1285_v41 = vshll.u32 %v2677_v47, 16  ;;  %v1912_v21 = vunpack.c.l.b16 %v1378_v61  ;;  %v2694_v57 = vld [vmem:[%s3638_s9 + $0x60] sm:$0xe] }
  0xf1   : > { %v945_v3 = vsel %vm3656_vm13, %v940_v50, %v944_v34  ;;  %v1284_v59 = vrot.slane %v1282_v0, 4  ;;  %v1291_v4 = vshll.u32 %v3941_v58, 16  ;;  %v1787_v7 = vunpack.c.l.b16 %v1081_v1  ;;  %v781_v0 = vld [vmem:[%s3638_s9 + $0x24] sm:$0xf] }
  0xf2   : > { %v1744_v5 = vunpack.c.l.b16 %v945_v3  ;;  %v1084_v6 = vsel %vm3634_vm10, %v1082_v48, %v1083_v55  ;;  %v1287_v8 = vrot.slane %v1285_v41, 5  ;;  %v1295_v11 = vshrl.u32 %v3941_v58, 16  ;;  %v3990_v3 = vld [vmem:[%s3638_s9 + $0x28] sm:$0xf] }
  0xf3   : > { %v1788_v9 = vunpack.c.l.b16 %v1084_v6  ;;  %v1293_v10 = vrot.slane %v1291_v4, 5  ;;  %v1301_v12 = vshll.u32 %v3950_v2, 16  ;;  %v1234_v18 = vshrl.u32 %v2673_v43, 16 }
  0xf4   : > { %1771 = vrot.lane.b32.xlu0 %v1756_v60, %s3134_s12  ;;  %v1754_v15 = vpack.c.b16 %v1744_v5, %v1743_v63  ;;  %v1288_v17 = vor.u32 %v1287_v8, %v1284_v59  ;;  %v1237_v20 = vshll.u32 %v2673_v43, 16  ;;  %v1922_v23 = vpack.c.b16 %v1912_v21, %v1911_v56 }
  0xf5   : > { %v1297_v24 = vrot.slane %v1295_v11, 4  ;;  %v1243_v25 = vshll.u32 %v3916_v27, 16  ;;  %v1236_v44 = vrot.slane %v1234_v18, 4  ;;  %v1247_v29 = vshrl.u32 %v3916_v27, 16  ;;  %v794_v18 = vld [vmem:[%s3638_s9 + $0x2c] sm:$0x1] }
  0xf6   : > { %v1289_v28 = vrot.slane %v1288_v17, 4  ;;  %v1239_v13 = vrot.slane %v1237_v20, 5  ;;  %v1303_v51 = vrot.slane %v1301_v12, 5  ;;  %v1253_v22 = vshll.u32 %v3925_v33, 16 }
  0xf7   : > { %v1298_v30 = vor.u32 %v1297_v24, %v1293_v10  ;;  %v1245_v31 = vrot.slane %v1243_v25, 5  ;;  %v1796_v37 = vpack.c.b16 %v1788_v9, %v1787_v7  ;;  %v1249_v27 = vrot.slane %v1247_v29, 4 }
  0xf8   : > { %1859 = vrot.lane.b32.xlu1 %v2894_v14, %s3132_s10  ;;  %1767 = vrot.lane.b32.xlu2 %v1754_v15, %s3134_s12  ;;  %v1294_v38 = vsel %vm3656_vm13, %v1289_v28, %v1293_v10  ;;  %v1240_v39 = vor.u32 %v1239_v13, %v1236_v44  ;;  %v1255_v42 = vrot.slane %v1253_v22, 5  ;;  %v1542_v33 = vshrl.u32 %v2715_v19, 16  ;;  %v4010_v44 = vpop.permute.xlu2 %1857 }
  0xf9   : > { %v1299_v16 = vrot.slane %v1298_v30, 4  ;;  %v1875_v26 = vunpack.c.l.b16 %v1294_v38  ;;  %v1250_v47 = vor.u32 %v1249_v27, %v1245_v31  ;;  %v1545_v49 = vshll.u32 %v2715_v19, 16  ;;  %v997_v30 = vld [vmem:[%s3638_s9 + $0x24] sm:$0xe] }
  0xfa   : > { %v1241_v46 = vrot.slane %v1240_v39, 4  ;;  %v1551_v34 = vshll.u32 %v3967_v32, 16  ;;  %v1544_v53 = vrot.slane %v1542_v33, 4  ;;  %v1555_v54 = vshrl.u32 %v3967_v32, 16 }
  0xfb   : > { %v1304_v52 = vsel %vm3656_vm13, %v1299_v16, %v1303_v51  ;;  %v1561_v56 = vshll.u32 %v3975_v40, 16  ;;  %v1251_v50 = vrot.slane %v1250_v47, 4  ;;  %v1547_v61 = vrot.slane %v1545_v49, 5  ;;  %v777_v51 = vld [vmem:[%s3638_s9 + $0xc] sm:$0xf]  ;;  %v2900_v49 = vld [vmem:[%s3638_s9 + $0x54] sm:$0xff] }
  0xfc   : > { %1855 = vrot.lane.b32.xlu0 %v2892_v36, %s3132_s10  ;;  %v1876_v55 = vunpack.c.l.b16 %v1304_v52  ;;  %v1246_v60 = vsel %vm3656_vm13, %v1241_v46, %v1245_v31  ;;  %v1553_v1 = vrot.slane %v1551_v34, 5  ;;  %v1557_v48 = vrot.slane %v1555_v54, 4  ;;  %v792_v54 = vld [vmem:[%s3638_s9 + $0x14] sm:$0x1] }
  0xfd   : > { %v1871_v63 = vunpack.c.l.b16 %v1246_v60  ;;  %v1563_v41 = vrot.slane %v1561_v56, 5  ;;  %v1256_v59 = vsel %vm3656_vm13, %v1251_v50, %v1255_v42  ;;  %v1548_v4 = vor.u32 %v1547_v61, %v1544_v53 }
  0xfe   : > { %v1884_v21 = vpack.c.b16 %v1876_v55, %v1875_v26  ;;  %v2702_v43 = vrot.slane %v2694_v57, 9  ;;  %v1872_v5 = vunpack.c.l.b16 %v1256_v59  ;;  %v1558_v6 = vor.u32 %v1557_v48, %v1553_v1  ;;  %v778_v26 = vld [vmem:[%s3638_s9 + $0x10] sm:$0xf]  ;;  %v995_v48 = vld [vmem:[%s3638_s9 + $0xc] sm:$0xe] }
  0xff   : > { %v1388_v7 = vrot.slane %v3941_v58, 5  ;;  %v1391_v8 = vrot.slane %v3950_v2, 5  ;;  %v1549_v9 = vrot.slane %v1548_v4, 4  ;;  %v875_v10 = vshrl.u32 %v781_v0, 16  ;;  %v2902_v2 = vld [vmem:[%s3638_s9 + $0x6c] sm:$0xff] }
 0x100   : > { %1935 = vrot.lane.b32.xlu1 %v1922_v23, %s3137_s23  ;;  %1811 = vrot.lane.b32.xlu2 %v1796_v37, %s3133_s11  ;;  %v878_v11 = vshll.u32 %v781_v0, 16  ;;  %v884_v12 = vshll.u32 %v3990_v3, 16  ;;  %v1559_v14 = vrot.slane %v1558_v6, 4  ;;  %v1882_v28 = vpack.c.b16 %v1872_v5, %v1871_v63  ;;  %v2719_v4 = vld [vmem:[%s3638_s9 + $0x6c] sm:$0xf] }
 0x101   : > { %v1390_v15 = vrot.slane %v1388_v7, 4  ;;  %v1554_v17 = vsel %vm3656_vm13, %v1549_v9, %v1553_v1  ;;  %v877_v58 = vrot.slane %v875_v10, 4  ;;  %v1389_v24 = vsel %vm3634_vm10, %v2702_v43, %v1388_v7 }
 0x102   : > { %v880_v20 = vrot.slane %v878_v11, 5  ;;  %v1564_v23 = vsel %vm3656_vm13, %v1559_v14, %v1563_v41  ;;  %v886_v29 = vrot.slane %v884_v12, 5  ;;  %v888_v19 = vshrl.u32 %v3990_v3, 16 }
 0x103   : > { %v1392_v25 = vsel %vm3634_vm10, %v1390_v15, %v1391_v8  ;;  %v1999_v31 = vunpack.c.l.b16 %v1554_v17  ;;  %v2000_v22 = vunpack.c.l.b16 %v1564_v23  ;;  %v894_v36 = vshll.u32 %v794_v18, 16 }
 0x104   : > { %1899 = vrot.lane.b32.xlu0 %v1884_v21, %s3135_s13  ;;  %v881_v13 = vor.u32 %v880_v20, %v877_v58  ;;  %v1052_v37 = vrot.slane %v3990_v3, 5  ;;  %v1915_v38 = vunpack.c.l.b16 %v1389_v24  ;;  %v1916_v39 = vunpack.c.l.b16 %v1392_v25  ;;  %v2720_v24 = vld [vmem:[%s3638_s9 + $0x70] sm:$0xf] }
 0x105   : > { %v890_v16 = vrot.slane %v888_v19, 4  ;;  %v896_v42 = vrot.slane %v894_v36, 5  ;;  %v2656_v33 = vrot.slane %v997_v30, 9  ;;  %v1055_v46 = vrot.slane %v794_v18, 5 }
 0x106   : > { %v882_v27 = vrot.slane %v881_v13, 4  ;;  %v827_v47 = vshrl.u32 %v777_v51, 16  ;;  %v1054_v53 = vrot.slane %v1052_v37, 4  ;;  %v830_v56 = vshll.u32 %v777_v51, 16 }
 0x107   : > { %v891_v52 = vor.u32 %v890_v16, %v886_v29  ;;  %v2010_v55 = vpack.c.b16 %v2000_v22, %v1999_v31  ;;  %v836_v50 = vshll.u32 %v778_v26, 16  ;;  %v1924_v61 = vpack.c.b16 %v1916_v39, %v1915_v38 }
 0x108   : > { %1987 = vrot.lane.b32.xlu1 %v2902_v2, %s3136_s14  ;;  %1895 = vrot.lane.b32.xlu2 %v1882_v28, %s3135_s13  ;;  %v887_v34 = vsel %vm3656_vm13, %v882_v27, %v886_v29  ;;  %v829_v60 = vrot.slane %v827_v47, 4  ;;  %v832_v63 = vrot.slane %v830_v56, 5  ;;  %v840_v1 = vshrl.u32 %v778_v26, 16  ;;  %v2728_v29 = vld [vmem:[%s3638_s9 + $0x74] sm:$0x1] }
 0x109   : > { %v4023_v57 = vpop.permute.xlu1 %1805  ;;  %v892_v0 = vrot.slane %v891_v52, 4  ;;  %v1739_v41 = vunpack.c.l.b16 %v887_v34  ;;  %v1053_v3 = vsel %vm3634_vm10, %v2656_v33, %v1052_v37  ;;  %v838_v21 = vrot.slane %v836_v50, 5  ;;  %v2669_v34 = vld [vmem:[%s3638_s9 + $0x30] sm:$0xf] }
 0x10a   : > { %v846_v59 = vshll.u32 %v792_v54, 16  ;;  %v1056_v5 = vsel %vm3634_vm10, %v1054_v53, %v1055_v46  ;;  %v833_v6 = vor.u32 %v832_v63, %v829_v60  ;;  %v842_v7 = vrot.slane %v840_v1, 4  ;;  %v4058_v63 = vld [vmem:[%s3638_s9 + $0x34] sm:$0xf] }
 0x10b   : > { %v897_v43 = vsel %vm3656_vm13, %v892_v0, %v896_v42  ;;  %v2654_v10 = vrot.slane %v995_v48, 9  ;;  %v1038_v11 = vrot.slane %v778_v26, 5  ;;  %v1041_v18 = vrot.slane %v792_v54, 5  ;;  %v2736_v42 = vld [vmem:[%s3638_s9 + $0x6c] sm:$0xe] }
 0x10c   : > { %1983 = vrot.lane.b32.xlu0 %v2900_v49, %s3136_s14  ;;  %v1740_v8 = vunpack.c.l.b16 %v897_v43  ;;  %v848_v9 = vrot.slane %v846_v59, 5  ;;  %v4036_v14 = vpop.permute.xlu2 %1933  ;;  %v834_v15 = vrot.slane %v833_v6, 4  ;;  %v843_v17 = vor.u32 %v842_v7, %v838_v21 }
 0x10d   : > { %v1590_v58 = vshrl.u32 %v2719_v4, 16  ;;  %v1779_v20 = vunpack.c.l.b16 %v1053_v3  ;;  %v1780_v2 = vunpack.c.l.b16 %v1056_v5  ;;  %v1040_v23 = vrot.slane %v1038_v11, 4 }
 0x10e   : > { %v4034_v12 = vpop.permute.xlu0 %1765  ;;  %v1752_v25 = vpack.c.b16 %v1740_v8, %v1739_v41  ;;  %v839_v28 = vsel %vm3656_vm13, %v834_v15, %v838_v21  ;;  %v844_v13 = vrot.slane %v843_v17, 4  ;;  %v1039_v51 = vsel %vm3634_vm10, %v2654_v10, %v1038_v11  ;;  %v2734_v15 = vld [vmem:[%s3638_s9 + $0x54] sm:$0xe] }
 0x10f   : > { %v1735_v30 = vunpack.c.l.b16 %v839_v28  ;;  %v1042_v31 = vsel %vm3634_vm10, %v1040_v23, %v1041_v18  ;;  %v1592_v36 = vrot.slane %v1590_v58, 4  ;;  %v1593_v37 = vshll.u32 %v2719_v4, 16 }
 0x110   : > { %2023 = vrot.lane.b32.xlu1 %v2010_v55, %s3138_s24  ;;  %1939 = vrot.lane.b32.xlu2 %v1924_v61, %s3137_s23  ;;  %v849_v22 = vsel %vm3656_vm13, %v844_v13, %v848_v9  ;;  %v1599_v38 = vshll.u32 %v2720_v24, 16  ;;  %v1792_v39 = vpack.c.b16 %v1780_v2, %v1779_v20  ;;  %v1603_v16 = vshrl.u32 %v2720_v24, 16  ;;  %v4073_v9 = vld [vmem:[%s3638_s9 + $0x38] sm:$0x1]  ;;  %v2883_v13 = vld [vmem:[%s3638_s9 + $0x30] sm:$0xff] }
 0x111   : > { %v4044_v19 = vpop.permute.xlu1 %1809  ;;  %v1736_v27 = vunpack.c.l.b16 %v849_v22  ;;  %v1609_v26 = vshll.u32 %v2728_v29, 16  ;;  %v1775_v33 = vunpack.c.l.b16 %v1039_v51  ;;  %v1776_v46 = vunpack.c.l.b16 %v1042_v31  ;;  %v2888_v2 = vld [vmem:[%s3638_s9 + $0x18] sm:$0xff] }
 0x112   : > { %v1595_v47 = vrot.slane %v1593_v37, 5  ;;  %v1601_v49 = vrot.slane %v1599_v38, 5  ;;  %v1605_v53 = vrot.slane %v1603_v16, 4  ;;  %v2744_v55 = vrot.slane %v2736_v42, 9  ;;  %v4092_v42 = vld [vmem:[%s3638_s9 + $0x1c] sm:$0xf] }
 0x113   : > { %v1750_v52 = vpack.c.b16 %v1736_v27, %v1735_v30  ;;  %v1696_v60 = vrot.slane %v2720_v24, 5  ;;  %v1699_v50 = vrot.slane %v2728_v29, 5  ;;  %v1611_v0 = vrot.slane %v1609_v26, 5 }
 0x114   : > { %1763 = vrot.lane.b32.xlu0 %v1752_v25, %s3134_s12  ;;  %v1596_v56 = vor.u32 %v1595_v47, %v1592_v36  ;;  %v1606_v61 = vor.u32 %v1605_v53, %v1601_v49  ;;  %v1186_v1 = vshrl.u32 %v2669_v34, 16  ;;  %v1189_v48 = vshll.u32 %v2669_v34, 16  ;;  %v4062_v41 = vpop.permute.xlu2 %1985  ;;  %v2885_v34 = vld [vmem:[%s3638_s9 + $0x48] sm:$0xff] }
 0x115   : > { %v1790_v3 = vpack.c.b16 %v1776_v46, %v1775_v33  ;;  %v1697_v59 = vsel %vm3634_vm10, %v2744_v55, %v1696_v60  ;;  %v1698_v4 = vrot.slane %v1696_v60, 4  ;;  %v1195_v11 = vshll.u32 %v4058_v63, 16 }
 0x116   : > { %v4055_v54 = vpop.permute.xlu0 %1769  ;;  %v1597_v21 = vrot.slane %v1596_v56, 4  ;;  %v1607_v43 = vrot.slane %v1606_v61, 4  ;;  %v1188_v5 = vrot.slane %v1186_v1, 4  ;;  %v1191_v10 = vrot.slane %v1189_v48, 5 }
 0x117   : > { %v1700_v8 = vsel %vm3634_vm10, %v1698_v4, %v1699_v50  ;;  %v2043_v58 = vunpack.c.l.b16 %v1697_v59  ;;  %v1197_v25 = vrot.slane %v1195_v11, 5  ;;  %v1199_v28 = vshrl.u32 %v4058_v63, 16  ;;  %v2217_v59 = vld [vmem:[%s4435_s1 + $0x10] sm:$0x3] }
 0x118   : > { %1803 = vrot.lane.b32.xlu1 %v1792_v39, %s3133_s11  ;;  %1759 = vrot.lane.b32.xlu2 %v1750_v52, %s3134_s12  ;;  %v1602_v7 = vsel %vm3656_vm13, %v1597_v21, %v1601_v49  ;;  %v1612_v17 = vsel %vm3656_vm13, %v1607_v43, %v1611_v0  ;;  %v2044_v20 = vunpack.c.l.b16 %v1700_v8  ;;  %v1192_v24 = vor.u32 %v1191_v10, %v1188_v5  ;;  %v2665_v39 = vld [vmem:[%s3638_s9 + $0x18] sm:$0xf]  ;;  %v2690_v8 = vld [vmem:[%s3638_s9 + $0x30] sm:$0xe] }
 0x119   : > { %v2003_v18 = vunpack.c.l.b16 %v1602_v7  ;;  %v2004_v23 = vunpack.c.l.b16 %v1612_v17  ;;  %v1205_v29 = vshll.u32 %v4073_v9, 16  ;;  %v2742_v30 = vrot.slane %v2734_v15, 9 }
 0x11a   : > { %v4066_v6 = vpop.permute.xlu1 %1897  ;;  %v1682_v51 = vrot.slane %v3967_v32, 5  ;;  %v1193_v36 = vrot.slane %v1192_v24, 4  ;;  %v1201_v37 = vrot.slane %v1199_v28, 4  ;;  %v1685_v38 = vrot.slane %v3975_v40, 5  ;;  %v4099_v40 = vld [vmem:[%s3638_s9 + $0x20] sm:$0x1] }
 0x11b   : > { %v2012_v22 = vpack.c.b16 %v2004_v23, %v2003_v18  ;;  %v2052_v27 = vpack.c.b16 %v2044_v20, %v2043_v58  ;;  %v1207_v46 = vrot.slane %v1205_v29, 5  ;;  %v2084_v49 = vsel %vm2069_vm14, %v2883_v13, %v4034_v12  ;;  %v2711_v28 = vld [vmem:[%s3638_s9 + $0x3c] sm:$0xf] }
 0x11c   : > { %1799 = vrot.lane.b32.xlu0 %v1790_v3, %s3133_s11  ;;  %v1683_v16 = vsel %vm3634_vm10, %v2742_v30, %v1682_v51  ;;  %v1684_v26 = vrot.slane %v1682_v51, 4  ;;  %v1198_v32 = vsel %vm3656_vm13, %v1193_v36, %v1197_v25  ;;  %v1202_v33 = vor.u32 %v1201_v37, %v1197_v25 }
 0x11d   : > { %v2039_v47 = vunpack.c.l.b16 %v1683_v16  ;;  %v1138_v53 = vshrl.u32 %v2665_v39, 16  ;;  %v1141_v56 = vshll.u32 %v2665_v39, 16  ;;  %v1147_v0 = vshll.u32 %v4092_v42, 16  ;;  %v4148_v39 = vld [vmem:[%s3638_s9 + $0x44] sm:$0x1] }
 0x11e   : > { %v4085_v31 = vpop.permute.xlu0 %1893  ;;  %v1686_v52 = vsel %vm3634_vm10, %v1684_v26, %v1685_v38  ;;  %v1203_v50 = vrot.slane %v1202_v33, 4  ;;  %v1151_v1 = vshrl.u32 %v4092_v42, 16  ;;  %v1867_v48 = vunpack.c.l.b16 %v1198_v32  ;;  %v2904_v26 = vld [vmem:[%s4435_s1 + $0x8] sm:$0xff]  ;;  %v2707_v33 = vld [vmem:[%s3638_s9 + $0x24] sm:$0xf] }
 0x11f   : > { %v2040_v61 = vunpack.c.l.b16 %v1686_v52  ;;  %v1140_v3 = vrot.slane %v1138_v53, 4  ;;  %v1143_v12 = vrot.slane %v1141_v56, 5  ;;  %v1157_v21 = vshll.u32 %v4099_v40, 16  ;;  %v2896_v56 = vld [vmem:[%s3638_s9 + $0x24] sm:$0xff] }
 0x120   : > { %1847 = vrot.lane.b32.xlu1 %v2888_v2, %s3132_s10  ;;  %2027 = vrot.lane.b32.xlu2 %v2012_v22, %s3138_s24  ;;  %v2104_v4 = vsel %vm2094_vm15, %v2084_v49, %v4023_v57  ;;  %v1208_v43 = vsel %vm3656_vm13, %v1203_v50, %v1207_v46  ;;  %v1149_v7 = vrot.slane %v1147_v0, 5  ;;  %v2090_v10 = vsel %vm2069_vm14, %v2885_v34, %v4055_v54  ;;  %v4138_v22 = vld [vmem:[%s3638_s9 + $0x40] sm:$0xf] }
 0x121   : > { %v2050_v5 = vpack.c.b16 %v2040_v61, %v2039_v47  ;;  %v1868_v11 = vunpack.c.l.b16 %v1208_v43  ;;  %v1144_v15 = vor.u32 %v1143_v12, %v1140_v3  ;;  %v1153_v17 = vrot.slane %v1151_v1, 4  ;;  %v2890_v47 = vld [vmem:[%s3638_s9 + $0x30] sm:$0xff]  ;;  %v4168_v1 = vld [vmem:[%s3638_s9 + $0x28] sm:$0xf] }
 0x122   : > { %v4106_v55 = vpop.permute.xlu1 %1981  ;;  %v4108_v60 = vpop.permute.xlu2 %2021  ;;  %v1159_v58 = vrot.slane %v1157_v21, 5  ;;  %v2231_v20 = vunpack.c.l.b16 %v2217_v59  ;;  %v1360_v57 = vrot.slane %v4058_v63, 5  ;;  %v2698_v25 = vrot.slane %v2690_v8, 9  ;;  %v4173_v21 = vld [vmem:[%s3638_s9 + $0x2c] sm:$0x1]  ;;  %v2903_v8 = vld [vmem:[%s4435_s1] sm:$0xff] }
 0x123   : > { %v1880_v2 = vpack.c.b16 %v1868_v11, %v1867_v48  ;;  %v1145_v23 = vrot.slane %v1144_v15, 4  ;;  %v1154_v24 = vor.u32 %v1153_v17, %v1149_v7  ;;  %v1363_v29 = vrot.slane %v4073_v9, 5 }
 0x124   : > { %2067 = vrot.lane.b32.xlu0 %v2052_v27, %s3139_s27  ;;  %v2234_v54 = vpack.c.b16 %v2231_v20, %v2231_v20  ;;  %v1362_v13 = vrot.slane %v1360_v57, 4  ;;  %v4132_v30 = vsel %vm2111_vm0, %v2104_v4, %v3977_v45  ;;  %v2108_v36 = vsel %vm2094_vm15, %v2090_v10, %v4044_v19 }
 0x125   : > { %v1150_v63 = vsel %vm3656_vm13, %v1145_v23, %v1149_v7  ;;  %v1155_v51 = vrot.slane %v1154_v24, 4  ;;  %v1494_v27 = vshrl.u32 %v2711_v28, 16  ;;  %v1361_v19 = vsel %vm3634_vm10, %v2698_v25, %v1360_v57 }
 0x126   : > { %v4124_v18 = vpop.permute.xlu0 %1937  ;;  %v1863_v38 = vunpack.c.l.b16 %v1150_v63  ;;  %v2256_v45 = vsel %vm2254_vm1, %v2234_v54, 0  ;;  %v1497_v32 = vshll.u32 %v2711_v28, 16  ;;  %v1364_v49 = vsel %vm3634_vm10, %v1362_v13, %v1363_v29 }
 0x127   : > { %v1160_v16 = vsel %vm3656_vm13, %v1155_v51, %v1159_v58  ;;  %2946 = vmatpush.bf16.msra.mxu3 %v2256_v45  ;;  %2945 = vmatpush.bf16.msra.mxu2 %v2256_v45  ;;  %v1496_v34 = vrot.slane %v1494_v27, 4  ;;  %v1503_v52 = vshll.u32 %v4138_v22, 16  ;;  %v2125_v53 = vsel %vm2111_vm0, %v2108_v36, %v4010_v44 }
 0x128   : > { %2063 = vrot.lane.b32.xlu2 %v2050_v5, %s3139_s27  ;;  %1891 = vrot.lane.b32.xlu1 %v1880_v2, %s3135_s13  ;;  %v1864_v46 = vunpack.c.l.b16 %v1160_v16  ;;  %v1499_v50 = vrot.slane %v1497_v32, 5  ;;  %v1507_v61 = vshrl.u32 %v4138_v22, 16  ;;  %v1513_v0 = vshll.u32 %v4148_v39, 16 }
 0x129   : > { %2944 = vmatpush.bf16.msra.mxu1 %v2256_v45  ;;  %2263 = vmatpush.bf16.msra.mxu0 %v2256_v45  ;;  %v1505_v12 = vrot.slane %v1503_v52, 5  ;;  %v1446_v59 = vshrl.u32 %v2707_v33, 16  ;;  %v1449_v4 = vshll.u32 %v2707_v33, 16  ;;  %v1907_v43 = vunpack.c.l.b16 %v1361_v19  ;;  %v2732_v19 = vld [vmem:[%s3638_s9 + $0x3c] sm:$0xe] }
 0x12a   : > { %v4142_v37 = vpop.permute.xlu1 %1761  ;;  %v4144_v9 = vpop.permute.xlu2 %1801  ;;  %v1878_v48 = vpack.c.b16 %v1864_v46, %v1863_v38  ;;  %v1908_v5 = vunpack.c.l.b16 %v1364_v49  ;;  %v1500_v44 = vor.u32 %v1499_v50, %v1496_v34  ;;  %v1509_v7 = vrot.slane %v1507_v61, 4 }
 0x12b   : > { %2949 = vmatpush.bf16.msra.mxu3 %v2904_v26  ;;  %2948 = vmatpush.bf16.msra.mxu2 %v2904_v26  ;;  %v1448_v10 = vrot.slane %v1446_v59, 4  ;;  %v1451_v11 = vrot.slane %v1449_v4, 5  ;;  %v1455_v15 = vshll.u32 %v4168_v1, 16  ;;  %v1459_v17 = vshrl.u32 %v4168_v1, 16 }
 0x12c   : > { %1887 = vrot.lane.b32.xlu0 %v1878_v48, %s3135_s13  ;;  %v1501_v58 = vrot.slane %v1500_v44, 4  ;;  %v1510_v20 = vor.u32 %v1509_v7, %v1505_v12  ;;  %v1515_v57 = vrot.slane %v1513_v0, 5  ;;  %v1465_v2 = vshll.u32 %v4173_v21, 16  ;;  %s2872_s13 = sshll.u32 %s3113_s18, 2  ;;  %s2506_s18 = sshll.u32 %s3253_s8, 4  ;;  %s2507_s18 = int_to_ptr.vmem [resolvable:$true] %s2506_s18 }
 0x12d   : > { %2947 = vmatpush.bf16.msra.mxu1 %v2904_v26  ;;  %v2142_v23 = vsel %vm2128_vm2, %v2125_v53, %v4066_v6  ;;  %v1452_v28 = vor.u32 %v1451_v11, %v1448_v10  ;;  %v1457_v54 = vrot.slane %v1455_v15, 5  ;;  %v1461_v13 = vrot.slane %v1459_v17, 4  ;;  %2264 = vmatpush.bf16.msra.mxu0 %v2904_v26  ;;  %v2688_v6 = vld [vmem:[%s3638_s9 + $0x18] sm:$0xe] }
 0x12e   : > { %v4170_v3 = vpop.permute.xlu0 %1757  ;;  %v2159_v29 = vsel %vm2145_vm3, %v2142_v23, %v4124_v18  ;;  %v1920_v63 = vpack.c.b16 %v1908_v5, %v1907_v43  ;;  %v1506_v51 = vsel %vm3656_vm13, %v1501_v58, %v1505_v12  ;;  %v1511_v36 = vrot.slane %v1510_v20, 4  ;;  %v2730_v58 = vld [vmem:[%s3638_s9 + $0x24] sm:$0xe] }
 0x12f   : > { %2952 = vmatpush.bf16.msra.mxu3 %v2903_v8  ;;  %2951 = vmatpush.bf16.msra.mxu2 %v2903_v8  ;;  %v1995_v38 = vunpack.c.l.b16 %v1506_v51  ;;  %v1453_v45 = vrot.slane %v1452_v28, 4  ;;  %v1462_v27 = vor.u32 %v1461_v13, %v1457_v54  ;;  %v1467_v16 = vrot.slane %v1465_v2, 5  ;;  %v2898_v13 = vld [vmem:[%s3638_s9 + $0x3c] sm:$0xff] }
 0x130   : > { %1851 = vrot.lane.b32.xlu2 %v2890_v47, %s3132_s10  ;;  %1975 = vrot.lane.b32.xlu1 %v2896_v56, %s3136_s14  ;;  %v2138_v26 = vsel %vm2128_vm2, %v4132_v30, %v4085_v31  ;;  %v1516_v18 = vsel %vm3656_vm13, %v1511_v36, %v1515_v57  ;;  %v1668_v32 = vrot.slane %v4138_v22, 5  ;;  %v2696_v34 = vrot.slane %v2688_v6, 9 }
 0x131   : > { %2950 = vmatpush.bf16.msra.mxu1 %v2903_v8  ;;  %v1996_v46 = vunpack.c.l.b16 %v1516_v18  ;;  %v1458_v47 = vsel %vm3656_vm13, %v1453_v45, %v1457_v54  ;;  %v1463_v49 = vrot.slane %v1462_v27, 4  ;;  %2265 = vmatpush.bf16.msra.mxu0 %v2903_v8  ;;  %v2176_v52 = vsel %vm2162_vm4, %v2159_v29, %v4062_v41 }
 0x132   : > { %v4186_v24 = vpop.permute.xlu1 %1797  ;;  %v4188_v25 = vpop.permute.xlu2 %1845  ;;  %v2740_v31 = vrot.slane %v2732_v19, 9  ;;  %v1991_v53 = vunpack.c.l.b16 %v1458_v47  ;;  %v1346_v56 = vrot.slane %v4092_v42, 5  ;;  %v1670_v61 = vrot.slane %v1668_v32, 4 }
 0x133   : > { %v2008_v30 = vpack.c.b16 %v1996_v46, %v1995_v38  ;;  %v1468_v22 = vsel %vm3656_vm13, %v1463_v49, %v1467_v16  ;;  %v1671_v0 = vrot.slane %v4148_v39, 5  ;;  %v1349_v48 = vrot.slane %v4099_v40, 5  ;;  %v2881_v38 = vld [vmem:[%s3638_s9 + $0x18] sm:$0xff] }
 0x134   : > { %1931 = vrot.lane.b32.xlu0 %v1920_v63, %s3137_s23  ;;  %v1992_v50 = vunpack.c.l.b16 %v1468_v22  ;;  %v2155_v41 = vsel %vm2145_vm3, %v2138_v26, %v4036_v14  ;;  %v1347_v62 = vsel %vm3634_vm10, %v2696_v34, %v1346_v56  ;;  %v1348_v42 = vrot.slane %v1346_v56, 4  ;;  %v2879_v26 = vld [vmem:[%s3638_s9] sm:$0xff] }
 0x135   : > { %v2172_v43 = vsel %vm2162_vm4, %v2155_v41, %v4106_v55  ;;  %v1903_v40 = vunpack.c.l.b16 %v1347_v62  ;;  %v1669_v44 = vsel %vm3634_vm10, %v2740_v31, %v1668_v32  ;;  %v1672_v7 = vsel %vm3634_vm10, %v1670_v61, %v1671_v0 }
 0x136   : > { %v2026_v33 = vpop.permute.xlu0 %2025  ;;  %v2006_v5 = vpack.c.b16 %v1992_v50, %v1991_v53  ;;  %v1350_v14 = vsel %vm3634_vm10, %v1348_v42, %v1349_v48  ;;  %v2189_v10 = vsel %vm2179_vm5, %v2172_v43, %v4108_v60  ;;  %v1654_v11 = vrot.slane %v4168_v1, 5  ;;  %v2884_v43 = vld [vmem:[%s3638_s9 + $0x3c] sm:$0xff] }
 0x137   : > { %v2193_v12 = vsel %vm2179_vm5, %v2176_v52, %v2026_v33  ;;  %v1904_v8 = vunpack.c.l.b16 %v1350_v14  ;;  %v2035_v20 = vunpack.c.l.b16 %v1669_v44  ;;  %v2036_v57 = vunpack.c.l.b16 %v1672_v7 }
 0x138   : > { %2019 = vrot.lane.b32.xlu1 %v2008_v30, %s3138_s24  ;;  %v2738_v60 = vrot.slane %v2730_v58, 9  ;;  %v1656_v28 = vrot.slane %v1654_v11, 4  ;;  %v1657_v54 = vrot.slane %v4173_v21, 5  ;;  %v2078_v16 = vsel %vm2069_vm14, %v2881_v38, %v4142_v37 }
 0x139   : > { %v1918_v17 = vpack.c.b16 %v1904_v8, %v1903_v40  ;;  %v2048_v1 = vpack.c.b16 %v2036_v57, %v2035_v20  ;;  %v2100_v18 = vsel %vm2094_vm15, %v2078_v16, %v4144_v9  ;;  %v2072_v46 = vsel %vm2069_vm14, %v2879_v26, %v4170_v3  ;;  %v2886_v57 = vld [vmem:[%s3638_s9 + $0x54] sm:$0xff] }
 0x13a   : > { %v2066_v59 = vpop.permute.xlu1 %2065  ;;  %v1890_v4 = vpop.permute.xlu2 %1889  ;;  %v1655_v63 = vsel %vm3634_vm10, %v2738_v60, %v1654_v11  ;;  %v1658_v51 = vsel %vm3634_vm10, %v1656_v28, %v1657_v54  ;;  %v2096_v47 = vsel %vm2094_vm15, %v2072_v46, %v4186_v24 }
 0x13b   : > { %v2210_v39 = vsel %vm2196_vm6, %v2193_v12, %v2066_v59  ;;  %1927 = vrot.lane.b32.xlu2 %v1918_v17, %s3137_s23  ;;  %v2031_v36 = vunpack.c.l.b16 %v1655_v63  ;;  %v2032_v6 = vunpack.c.l.b16 %v1658_v51  ;;  %v2113_v9 = vsel %vm2111_vm0, %v2096_v47, %v4188_v25 }
 0x13c   : > { %2855 = vmatmul.msk.bf16.vlgmr.msra.gmra.mxu3 %vm2237_vm7, %v2210_v39  ;;  %2015 = vrot.lane.b32.xlu0 %v2006_v5, %s3138_s24 }
 0x13d   : > { %v2046_v21 = vpack.c.b16 %v2032_v6, %v2031_v36 }
 0x13e   : > { %v2062_v55 = vpop.permute.xlu0 %2061 }
 0x13f   : > { %v2206_v15 = vsel %vm2196_vm6, %v2189_v10, %v2062_v55 }
 0x140   : > { %2853 = vmatmul.msk.bf16.vlgmr.msra.gmra.mxu2 %vm2237_vm7, %v2206_v15 }
 0x142   : > { %v1886_v2 = vpop.permute.xlu1 %1885  ;;  %v1974_v23 = vpop.permute.xlu2 %1973 }
 0x143   : > { %1979 = vrot.lane.b32.xlu2 %v2898_v13, %s3136_s14  ;;  %v2130_v31 = vsel %vm2128_vm2, %v2113_v9, %v1886_v2  ;;  %s2873_s14 = sshll.u32 %s3117_s19, 3 }
 0x144   : > { %2059 = vrot.lane.b32.xlu0 %v2048_v1, %s3139_s27  ;;  %s2503_s23 = sadd.s32 %s2873_s14, %s2872_s13  ;;  %s3055_s13 = scalar_lea.hbm %s4438_s4, 64 }
 0x146   : > { %v1850_v29 = vpop.permute.xlu0 %1849 }
 0x147   : > { %v2117_v35 = vsel %vm2111_vm0, %v2100_v18, %v1850_v29 }
 0x148   : > { %v2134_v49 = vsel %vm2128_vm2, %v2117_v35, %v1890_v4 }
 0x14a   : > { %v1930_v45 = vpop.permute.xlu1 %1929  ;;  %v2018_v27 = vpop.permute.xlu2 %2017 }
 0x14b   : > { %2055 = vrot.lane.b32.xlu2 %v2046_v21, %s3139_s27  ;;  %v2151_v37 = vsel %vm2145_vm3, %v2134_v49, %v1930_v45 }
 0x14e   : > { %v1926_v19 = vpop.permute.xlu0 %1925 }
 0x14f   : > { %v2147_v30 = vsel %vm2145_vm3, %v2130_v31, %v1926_v19  ;;  %v2880_v19 = vld [vmem:[%s3638_s9 + $0xc] sm:$0xff] }
 0x150   : > { %v2164_v56 = vsel %vm2162_vm4, %v2147_v30, %v1974_v23 }
 0x152   : > { %v2014_v32 = vpop.permute.xlu1 %2013  ;;  %v1768_v33 = vpop.permute.xlu2 %1767 }
 0x153   : > { %v2181_v50 = vsel %vm2179_vm5, %v2164_v56, %v2014_v32  ;;  %v2087_v40 = vsel %vm2069_vm14, %v2884_v43, %v1768_v33  ;;  %v2882_v32 = vld [vmem:[%s3638_s9 + $0x24] sm:$0xff] }
 0x156   : > { %v1978_v34 = vpop.permute.xlu0 %1977 }
 0x157   : > { %v2168_v52 = vsel %vm2162_vm4, %v2151_v37, %v1978_v34 }
 0x158   : > { %v2185_v3 = vsel %vm2179_vm5, %v2168_v52, %v2018_v27 }
 0x15a   : > { %v2058_v22 = vpop.permute.xlu1 %2057  ;;  %v1812_v53 = vpop.permute.xlu2 %1811 }
 0x15b   : > { %v2202_v24 = vsel %vm2196_vm6, %v2185_v3, %v2058_v22 }
 0x15c   : > { %2851 = vmatmul.msk.bf16.vlgmr.msra.gmra.mxu1 %vm2237_vm7, %v2202_v24 }
 0x15e   : > { %v2054_v61 = vpop.permute.xlu0 %2053 }
 0x15f   : > { %v2198_v25 = vsel %vm2196_vm6, %v2181_v50, %v2054_v61 }
 0x160   : > { %2849 = vmatmul.msk.bf16.vlgmr.msra.gmra.mxu0 %vm2237_vm7, %v2198_v25 }
 0x162   : > { %v1808_v0 = vpop.permute.xlu1 %1807  ;;  %v1896_v48 = vpop.permute.xlu2 %1895 }
 0x163   : > { %v2106_v44 = vsel %vm2094_vm15, %v2087_v40, %v1808_v0 }
 0x166   : > { %v1772_v41 = vpop.permute.xlu0 %1771 }
 0x167   : > { %v2093_v23 = vsel %vm2069_vm14, %v2886_v57, %v1772_v41  ;;  %v4313_v41 = vld [vmem:[%s4436_s2] ss:$0 sm:$0xff] }
 0x168   : > { %v2110_v60 = vsel %vm2094_vm15, %v2093_v23, %v1812_v53 }
 0x16a   : > { %v1860_v12 = vpop.permute.xlu1 %1859  ;;  %v1940_v59 = vpop.permute.xlu2 %1939 }
 0x16b   : > { %v2127_v28 = vsel %vm2111_vm0, %v2110_v60, %v1860_v12 }
 0x16e   : > { %v1856_v4 = vpop.permute.xlu0 %1855 }
 0x16f   : > { %v2123_v7 = vsel %vm2111_vm0, %v2106_v44, %v1856_v4 }
 0x170   : > { %v2140_v10 = vsel %vm2128_vm2, %v2123_v7, %v1896_v48 }
 0x172   : > { %v1936_v62 = vpop.permute.xlu1 %1935  ;;  %v1760_v42 = vpop.permute.xlu2 %1759 }
 0x173   : > { %v2157_v55 = vsel %vm2145_vm3, %v2140_v10, %v1936_v62  ;;  %v2075_v35 = vsel %vm2069_vm14, %v2880_v19, %v1760_v42 }
 0x176   : > { %v1900_v39 = vpop.permute.xlu0 %1899 }
 0x177   : > { %v2144_v1 = vsel %vm2128_vm2, %v2127_v28, %v1900_v39 }
 0x178   : > { %v2161_v29 = vsel %vm2145_vm3, %v2144_v1, %v1940_v59 }
 0x17a   : > { %v1988_v5 = vpop.permute.xlu1 %1987  ;;  %v2028_v14 = vpop.permute.xlu2 %2027 }
 0x17b   : > { %v2178_v63 = vsel %vm2162_vm4, %v2161_v29, %v1988_v5 }
 0x17c   : > { %v2195_v36 = vsel %vm2179_vm5, %v2178_v63, %v2028_v14 }
 0x17e   : > { %v1984_v8 = vpop.permute.xlu0 %1983 }
 0x17f   : > { %v2174_v11 = vsel %vm2162_vm4, %v2157_v55, %v1984_v8 }
 0x182   : > { %v2024_v15 = vpop.permute.xlu1 %2023  ;;  %v2064_v17 = vpop.permute.xlu2 %2063 }
 0x183   : > { %v2191_v58 = vsel %vm2179_vm5, %v2174_v11, %v2024_v15 }
 0x184   : > { %v2208_v20 = vsel %vm2196_vm6, %v2191_v58, %v2064_v17 }
 0x185   : > { %2854 = vmatmul.msk.bf16.gmra.mxu2 %vm2237_vm7, %v2208_v20 }
 0x186   : > { %v1764_v2 = vpop.permute.xlu0 %1763 }
 0x187   : > { %v2081_v37 = vsel %vm2069_vm14, %v2882_v32, %v1764_v2 }
 0x18a   : > { %v1804_v13 = vpop.permute.xlu1 %1803  ;;  %v1852_v51 = vpop.permute.xlu2 %1851 }
 0x18b   : > { %v2102_v34 = vsel %vm2094_vm15, %v2081_v37, %v1804_v13 }
 0x18c   : > { %v2119_v53 = vsel %vm2111_vm0, %v2102_v34, %v1852_v51 }
 0x18e   : > { %v1800_v54 = vpop.permute.xlu0 %1799 }
 0x18f   : > { %v2098_v33 = vsel %vm2094_vm15, %v2075_v35, %v1800_v54 }
 0x192   : > { %v1848_v45 = vpop.permute.xlu1 %1847 }
 0x193   : > { %v2115_v46 = vsel %vm2111_vm0, %v2098_v33, %v1848_v45 }
 0x195   : > { %v1928_v27 = vpop.permute.xlu2 %1927 }
 0x196   : > { %v2068_v6 = vpop.permute.xlu0 %2067 }
 0x197   : > { %v2212_v38 = vsel %vm2196_vm6, %v2195_v36, %v2068_v6 }
 0x198   : > { %2856 = vmatmul.msk.bf16.gmra.mxu3 %vm2237_vm7, %v2212_v38 }
 0x19a   : > { %v1892_v16 = vpop.permute.xlu1 %1891 }
 0x19b   : > { %v2136_v24 = vsel %vm2128_vm2, %v2119_v53, %v1892_v16 }
 0x19d   : > { %v1980_v26 = vpop.permute.xlu2 %1979 }
 0x19e   : > { %v1888_v21 = vpop.permute.xlu0 %1887 }
 0x19f   : > { %v2132_v49 = vsel %vm2128_vm2, %v2115_v46, %v1888_v21 }
 0x1a0   : > { %v2149_v52 = vsel %vm2145_vm3, %v2132_v49, %v1928_v27 }
 0x1a2   : > { %v1976_v47 = vpop.permute.xlu1 %1975 }
 0x1a3   : > { %v2166_v31 = vsel %vm2162_vm4, %v2149_v52, %v1976_v47 }
 0x1a5   : > { %v2056_v9 = vpop.permute.xlu2 %2055 }
 0x1a6   : > { %v1932_v18 = vpop.permute.xlu0 %1931 }
 0x1a7   : > { %v2153_v56 = vsel %vm2145_vm3, %v2136_v24, %v1932_v18 }
 0x1a8   : > { %v2170_v61 = vsel %vm2162_vm4, %v2153_v56, %v1980_v26 }
 0x1aa   : > { %v2020_v50 = vpop.permute.xlu1 %2019 }
 0x1ab   : > { %v2187_v25 = vsel %vm2179_vm5, %v2170_v61, %v2020_v50 }
 0x1ae   : > { %v2016_v30 = vpop.permute.xlu0 %2015 }
 0x1af   : > { %v2183_v22 = vsel %vm2179_vm5, %v2166_v31, %v2016_v30 }
 0x1b0   : > { %v2200_v3 = vsel %vm2196_vm6, %v2183_v22, %v2056_v9 }
 0x1b1   : > { %2850 = vmatmul.msk.bf16.gmra.mxu0 %vm2237_vm7, %v2200_v3 }
 0x1b6   : > { %v2060_v0 = vpop.permute.xlu0 %2059 }
 0x1b7   : > { %v2204_v48 = vsel %vm2196_vm6, %v2187_v25, %v2060_v0 }
 0x1b8   : > { %2852 = vmatmul.msk.bf16.gmra.mxu1 %vm2237_vm7, %v2204_v48 }
 0x1bf   : > { %v2297_v12 = vpop.f32.mrf.mxu3 }
 0x1c0   : > { %v2298_v59 = vadd.f32 %v4313_v41, %v2297_v12 }
 0x1c2   : > { %vm2319_vm8 = vcmp.gt.f32.partialorder %v2298_v59, 0.0  ;;  %v2335_v4 = vmul.f32 0.1, %v2298_v59 }
 0x1c3   : > { %v2287_v62 = vpop.f32.mrf.mxu2 }
 0x1c4   : > { %v2351_v42 = vsel %vm2319_vm8, %v2298_v59, %v2335_v4  ;;  %v2288_v43 = vadd.f32 %v4313_v41, %v2287_v62 }
 0x1c5   : > { %v2367_v39 = vpack.c.bf16 %v2351_v42, %v2351_v42 }
 0x1c6   : > { %vm2315_vm10 = vcmp.gt.f32.partialorder %v2288_v43, 0.0  ;;  %v2331_v40 = vmul.f32 0.1, %v2288_v43 }
 0x1c7   : > { %2384 = vst.msk [vmem:[%s3251_s25 + $0x30] sm:$0xf] %vm2371_vm9, %v2367_v39  ;;  %v2299_v5 = vpop.f32.mrf.mxu3 }
 0x1c8   : > { %v2347_v14 = vsel %vm2315_vm10, %v2288_v43, %v2331_v40  ;;  %v2300_v44 = vadd.f32 %v4313_v41, %v2299_v5 }
 0x1c9   : > { %v2363_v7 = vpack.c.bf16 %v2347_v14, %v2347_v14 }
 0x1ca   : > { %vm2320_vm11 = vcmp.gt.f32.partialorder %v2300_v44, 0.0  ;;  %v2336_v8 = vmul.f32 0.1, %v2300_v44 }
 0x1cb   : > { %2380 = vst.msk [vmem:[%s3251_s25 + $0x20] sm:$0xf] %vm2371_vm9, %v2363_v7  ;;  %v2289_v10 = vpop.f32.mrf.mxu2 }
 0x1cc   : > { %v2352_v55 = vsel %vm2320_vm11, %v2300_v44, %v2336_v8  ;;  %v2290_v11 = vadd.f32 %v4313_v41, %v2289_v10 }
 0x1cd   : > { %v2368_v15 = vpack.c.bf16 %v2352_v55, %v2352_v55 }
 0x1ce   : > { %vm2316_vm12 = vcmp.gt.f32.partialorder %v2290_v11, 0.0  ;;  %v2332_v17 = vmul.f32 0.1, %v2290_v11 }
 0x1cf   : > { %2385 = vst.msk [vmem:[%s3251_s25 + $0x34] sm:$0xf] %vm2371_vm9, %v2368_v15 }
 0x1d0   : > { %v2348_v58 = vsel %vm2316_vm12, %v2290_v11, %v2332_v17 }
 0x1d1   : > { %v2364_v20 = vpack.c.bf16 %v2348_v58, %v2348_v58 }
 0x1d3   : > { %2381 = vst.msk [vmem:[%s3251_s25 + $0x24] sm:$0xf] %vm2371_vm9, %v2364_v20 }
 0x1d6   : > { %v2942_v5 = vld [vmem:[%s3251_s25 + $0x30] sm:$0xff]  }
 0x1d7   : > { %v2931_v7 = vunpack.c.l.bf16 %v2942_v5  ;;  %v2932_v55 = vunpack.c.h.bf16 %v2942_v5 }
 0x1d9   : > { %v2277_v57 = vpop.f32.mrf.mxu1 }
 0x1da   : > { %v2278_v2 = vadd.f32 %v4313_v41, %v2277_v57  ;;  %v2940_v31 = vld [vmem:[%s3251_s25 + $0x20] sm:$0xff]  }
 0x1db   : > { %v2923_v53 = vunpack.c.l.bf16 %v2940_v31  ;;  %v2924_v24 = vunpack.c.h.bf16 %v2940_v31 }
 0x1dc   : > { %vm2311_vm13 = vcmp.gt.f32.partialorder %v2278_v2, 0.0  ;;  %v2327_v23 = vmul.f32 0.1, %v2278_v2 }
 0x1dd   : > { %v2267_v60 = vpop.f32.mrf.mxu0 }
 0x1de   : > { %v2343_v28 = vsel %vm2311_vm13, %v2278_v2, %v2327_v23  ;;  %v2268_v54 = vadd.f32 %v4313_v41, %v2267_v60 }
 0x1df   : > { %v2359_v1 = vpack.c.bf16 %v2343_v28, %v2343_v28 }
 0x1e0   : > { %vm2307_vm14 = vcmp.gt.f32.partialorder %v2268_v54, 0.0  ;;  %v2323_v13 = vmul.f32 0.1, %v2268_v54 }
 0x1e1   : > { %2376 = vst.msk [vmem:[%s3251_s25 + $0x10] sm:$0xf] %vm2371_vm9, %v2359_v1  ;;  %v2279_v29 = vpop.f32.mrf.mxu1 }
 0x1e2   : > { %v2339_v63 = vsel %vm2307_vm14, %v2268_v54, %v2323_v13  ;;  %v2280_v51 = vadd.f32 %v4313_v41, %v2279_v29 }
 0x1e3   : > { %v2355_v36 = vpack.c.bf16 %v2339_v63, %v2339_v63 }
 0x1e4   : > { %vm2312_vm0 = vcmp.gt.f32.partialorder %v2280_v51, 0.0  ;;  %v2328_v6 = vmul.f32 0.1, %v2280_v51 }
 0x1e5   : > { %2372 = vst.msk [vmem:[%s3251_s25] sm:$0xf] %vm2371_vm9, %v2355_v36  ;;  %v2269_v38 = vpop.f32.mrf.mxu0 }
 0x1e6   : > { %v2344_v45 = vsel %vm2312_vm0, %v2280_v51, %v2328_v6  ;;  %v2270_v27 = vadd.f32 %v4313_v41, %v2269_v38 }
 0x1e7   : > { %v2360_v21 = vpack.c.bf16 %v2344_v45, %v2344_v45 }
 0x1e8   : > { %vm2308_vm1 = vcmp.gt.f32.partialorder %v2270_v27, 0.0  ;;  %v2324_v16 = vmul.f32 0.1, %v2270_v27 }
 0x1e9   : > { %2377 = vst.msk [vmem:[%s3251_s25 + $0x14] sm:$0xf] %vm2371_vm9, %v2360_v21 }
 0x1ea   : > { %v2340_v19 = vsel %vm2308_vm1, %v2270_v27, %v2324_v16 }
 0x1eb   : > { %v2356_v26 = vpack.c.bf16 %v2340_v19, %v2340_v19 }
 0x1ed   : > { %2373 = vst.msk [vmem:[%s3251_s25 + $0x4] sm:$0xf] %vm2371_vm9, %v2356_v26 }
 0x208   : > { %v2292_v18 = vpop.f32.mrf.mxu2 }
 0x209   : > { %v2293_v35 = vadd.f32 %v4313_v41, %v2292_v18 }
 0x20b   : > { %vm2317_vm2 = vcmp.gt.f32.partialorder %v2293_v35, 0.0  ;;  %v2333_v32 = vmul.f32 0.1, %v2293_v35 }
 0x20d   : > { %v2349_v33 = vsel %vm2317_vm2, %v2293_v35, %v2333_v32  ;;  %v2906_v32 = vld [vmem:[%s3251_s25] sm:$0xff]  }
 0x20e   : > { %v2365_v46 = vpack.c.bf16 %v2349_v33, %v2349_v33 }
 0x210   : > { %2382 = vst.msk [vmem:[%s3251_s25 + $0x28] sm:$0xf] %vm2371_vm9, %v2365_v46  ;;  %v2294_v47 = vpop.f32.mrf.mxu2 }
 0x211   : > { %v2295_v49 = vadd.f32 %v4313_v41, %v2294_v47  ;;  %v2907_v47 = vunpack.c.l.bf16 %v2906_v32 }
 0x213   : > { %vm2318_vm3 = vcmp.gt.f32.partialorder %v2295_v49, 0.0  ;;  %v2334_v37 = vmul.f32 0.1, %v2295_v49 }
 0x215   : > { %v2350_v34 = vsel %vm2318_vm3, %v2295_v49, %v2334_v37  ;;  %v2908_v49 = vunpack.c.h.bf16 %v2906_v32 }
 0x216   : > { %v2366_v52 = vpack.c.bf16 %v2350_v34, %v2350_v34 }
 0x218   : > { %2383 = vst.msk [vmem:[%s3251_s25 + $0x2c] sm:$0xf] %vm2371_vm9, %v2366_v52 }
 0x21b   : > { %v2302_v9 = vpop.f32.mrf.mxu3 }
 0x21c   : > { %v2303_v30 = vadd.f32 %v4313_v41, %v2302_v9  ;;  %v2938_v9 = vld [vmem:[%s3251_s25 + $0x10] sm:$0xff]  }
 0x21e   : > { %vm2321_vm4 = vcmp.gt.f32.partialorder %v2303_v30, 0.0  ;;  %v2337_v22 = vmul.f32 0.1, %v2303_v30 }
 0x21f   : > { %v2941_v3 = vld [vmem:[%s3251_s25 + $0x28] sm:$0xff]  }
 0x220   : > { %v2927_v56 = vunpack.c.l.bf16 %v2941_v3  ;;  %v2928_v50 = vunpack.c.h.bf16 %v2941_v3  ;;  %v2353_v61 = vsel %vm2321_vm4, %v2303_v30, %v2337_v22  ;;  %v2915_v30 = vunpack.c.l.bf16 %v2938_v9 }
 0x221   : > { %v2369_v25 = vpack.c.bf16 %v2353_v61, %v2353_v61  ;;  %v2916_v22 = vunpack.c.h.bf16 %v2938_v9 }
 0x222   : > { %v2426_v0 = vadd.f32 %v2927_v56, %v2923_v53  ;;  %v2427_v48 = vadd.f32 %v2928_v50, %v2924_v24 }
 0x223   : > { %2386 = vst.msk [vmem:[%s3251_s25 + $0x38] sm:$0xf] %vm2371_vm9, %v2369_v25  ;;  %v2304_v12 = vpop.f32.mrf.mxu3 }
 0x224   : > { %2429 = vst.msk [vmem:[#allocation3 + $0x20] sm:$0xff] %vm2094_vm15, %v2426_v0  ;;  %v2305_v59 = vadd.f32 %v4313_v41, %v2304_v12 }
 0x225   : > { %2430 = vst.msk [vmem:[#allocation3 + $0x28] sm:$0xff] %vm2094_vm15, %v2427_v48 }
 0x226   : > { %vm2322_vm5 = vcmp.gt.f32.partialorder %v2305_v59, 0.0  ;;  %v2338_v4 = vmul.f32 0.1, %v2305_v59 }
 0x228   : > { %v2354_v62 = vsel %vm2322_vm5, %v2305_v59, %v2338_v4 }
 0x229   : > { %v2370_v42 = vpack.c.bf16 %v2354_v62, %v2354_v62 }
 0x22b   : > { %2387 = vst.msk [vmem:[%s3251_s25 + $0x3c] sm:$0xf] %vm2371_vm9, %v2370_v42 }
 0x22c   : > { %v2450_v43 = vld [vmem:[#allocation3 + $0x20] ss:$2 sm:$0xff]  ;;  %v2458_v39 = vld [vmem:[#allocation3 + $0x21] ss:$2 sm:$0xff] }
 0x22d   : > { %v2463_v40 = vadd.f32 %v2458_v39, %v2450_v43 }
 0x22e   : > { %v2272_v10 = vpop.f32.mrf.mxu0 }
 0x22f   : > { %v2467_v14 = vmul.f32 0.25, %v2463_v40  ;;  %v2273_v17 = vadd.f32 %v4313_v41, %v2272_v10 }
 0x231   : > { %v2471_v44 = vpack.c.bf16 %v2467_v14, %v2467_v14  ;;  %vm2309_vm6 = vcmp.gt.f32.partialorder %v2273_v17, 0.0  ;;  %v2325_v57 = vmul.f32 0.1, %v2273_v17 }
 0x232   : > { %v2943_v8 = vld [vmem:[%s3251_s25 + $0x38] sm:$0xff]  }
 0x233   : > { %v2935_v11 = vunpack.c.l.bf16 %v2943_v8  ;;  %v2936_v15 = vunpack.c.h.bf16 %v2943_v8  ;;  %2475 = vst.msk [vmem:[%s3253_s8 + $0x8] sm:$0xf] %vm2371_vm9, %v2471_v44  ;;  %v2341_v2 = vsel %vm2309_vm6, %v2273_v17, %v2325_v57 }
 0x234   : > { %v2357_v23 = vpack.c.bf16 %v2341_v2, %v2341_v2 }
 0x235   : > { %v2441_v58 = vadd.f32 %v2935_v11, %v2931_v7  ;;  %v2442_v20 = vadd.f32 %v2936_v15, %v2932_v55  ;;  %v2282_v60 = vpop.f32.mrf.mxu1 }
 0x236   : > { %2374 = vst.msk [vmem:[%s3251_s25 + $0x8] sm:$0xf] %vm2371_vm9, %v2357_v23  ;;  %v2283_v28 = vadd.f32 %v4313_v41, %v2282_v60  ;;  %v2274_v54 = vpop.f32.mrf.mxu0 }
 0x237   : > { %2444 = vst.msk [vmem:[#allocation3 + $0x30] sm:$0xff] %vm2094_vm15, %v2441_v58  ;;  %v2275_v1 = vadd.f32 %v4313_v41, %v2274_v54 }
 0x238   : > { %2445 = vst.msk [vmem:[#allocation3 + $0x38] sm:$0xff] %vm2094_vm15, %v2442_v20  ;;  %vm2313_vm7 = vcmp.gt.f32.partialorder %v2283_v28, 0.0  ;;  %v2329_v13 = vmul.f32 0.1, %v2283_v28 }
 0x239   : > { %vm2310_vm8 = vcmp.gt.f32.partialorder %v2275_v1, 0.0  ;;  %v2326_v29 = vmul.f32 0.1, %v2275_v1 }
 0x23a   : > { %v2345_v63 = vsel %vm2313_vm7, %v2283_v28, %v2329_v13 }
 0x23b   : > { %v2361_v51 = vpack.c.bf16 %v2345_v63, %v2345_v63  ;;  %v2342_v36 = vsel %vm2310_vm8, %v2275_v1, %v2326_v29 }
 0x23c   : > { %v2358_v45 = vpack.c.bf16 %v2342_v36, %v2342_v36 }
 0x23d   : > { %2378 = vst.msk [vmem:[%s3251_s25 + $0x18] sm:$0xf] %vm2371_vm9, %v2361_v51  ;;  %v2284_v21 = vpop.f32.mrf.mxu1 }
 0x23e   : > { %2375 = vst.msk [vmem:[%s3251_s25 + $0xc] sm:$0xf] %vm2371_vm9, %v2358_v45  ;;  %v2285_v16 = vadd.f32 %v4313_v41, %v2284_v21 }
 0x23f   : > { %v2452_v6 = vld [vmem:[#allocation3 + $0x30] ss:$2 sm:$0xff]  ;;  %v2460_v38 = vld [vmem:[#allocation3 + $0x31] ss:$2 sm:$0xff] }
 0x240   : > { %v2464_v27 = vadd.f32 %v2460_v38, %v2452_v6  ;;  %vm2314_vm10 = vcmp.gt.f32.partialorder %v2285_v16, 0.0  ;;  %v2330_v26 = vmul.f32 0.1, %v2285_v16 }
 0x242   : > { %v2468_v19 = vmul.f32 0.25, %v2464_v27  ;;  %v2346_v35 = vsel %vm2314_vm10, %v2285_v16, %v2330_v26 }
 0x243   : > { %v2362_v33 = vpack.c.bf16 %v2346_v35, %v2346_v35 }
 0x244   : > { %v2472_v18 = vpack.c.bf16 %v2468_v19, %v2468_v19 }
 0x245   : > { %v2937_v46 = vld [vmem:[%s3251_s25 + $0x8] sm:$0xff]   ;;  %2379 = vst.msk [vmem:[%s3251_s25 + $0x1c] sm:$0xf] %vm2371_vm9, %v2362_v33 }
 0x246   : > { %2476 = vst.msk [vmem:[%s3253_s8 + $0xc] sm:$0xf] %vm2371_vm9, %v2472_v18  ;;  %v2911_v37 = vunpack.c.l.bf16 %v2937_v46  ;;  %v2912_v41 = vunpack.c.h.bf16 %v2937_v46 }
 0x248   : > { %v2397_v34 = vadd.f32 %v2911_v37, %v2907_v47  ;;  %v2398_v52 = vadd.f32 %v2912_v41, %v2908_v49 }
 0x24a   : > { %2399 = vst.msk [vmem:[#allocation3] sm:$0xff] %vm2094_vm15, %v2397_v34 }
 0x24b   : > { %2400 = vst.msk [vmem:[#allocation3 + $0x8] sm:$0xff] %vm2094_vm15, %v2398_v52 }
 0x24c   : > { %v2939_v31 = vld [vmem:[%s3251_s25 + $0x18] sm:$0xff]   ;;  %s2874_s25 = sshll.u32 %s2503_s23, 2 }
 0x24d   : > { %v2919_v53 = vunpack.c.l.bf16 %v2939_v31  ;;  %v2920_v3 = vunpack.c.h.bf16 %v2939_v31  ;;  %s2505_s5 = scalar_lea.hbm %s4438_s4, %s2874_s25 }
 0x24e   : > { %s2508_s19 = sshll.u32 %s2505_s5, 4  ;;  %s2509_s19 = int_to_ptr.hbm [resolvable:$true] %s2508_s19 }
 0x24f   : > { %v2411_v24 = vadd.f32 %v2919_v53, %v2915_v30  ;;  %v2412_v56 = vadd.f32 %v2920_v3, %v2916_v22  ;;  %s3049_s11 = sshra.s32 %s2509_s19, 4  ;;  %s3050_s11 = int_to_ptr.hbm [resolvable:$true] %s3049_s11 }
 0x250   : > { %s3051_s30 = scalar_lea.hbm %s3050_s11, 16  ;;  %p3056_p5 = scmp.lt.s32.totalorder %s3050_s11, %s4438_s4 }
 0x251   : > { %2414 = vst.msk [vmem:[#allocation3 + $0x10] sm:$0xff] %vm2094_vm15, %v2411_v24  ;;  %p3052_p1 = scmp.ne.s32.totalorder %s3050_s11, %s3051_s30  ;;  %p3057_p6 = scmp.lt.s32.totalorder %s3055_s13, %s3051_s30 }
 0x252   : > { %2415 = vst.msk [vmem:[#allocation3 + $0x18] sm:$0xff] %vm2094_vm15, %v2412_v56  ;;  %v2446_v50 = vld [vmem:[#allocation3] ss:$2 sm:$0xff]  ;;  %v2454_v61 = vld [vmem:[#allocation3 + $0x1] ss:$2 sm:$0xff] }
 0x253   : > { %v2461_v25 = vadd.f32 %v2454_v61, %v2446_v50  ;;  %p3053_p2 = pnand %p3052_p1, %p3217_p3  ;;  %p3058_p7 = por %p3057_p6, %p3056_p5 }
 0x255   : > { %v2465_v0 = vmul.f32 0.25, %v2461_v25  ;;  %p3054_p4 = pneg %p3053_p2 }
 0x257   : > { %v2469_v48 = vpack.c.bf16 %v2465_v0, %v2465_v0  ;;  %p3059_p9 = pnand %p3058_p7, %p3054_p4 }
 0x259   : > { %v2448_v12 = vld [vmem:[#allocation3 + $0x10] ss:$2 sm:$0xff]  ;;  %v2456_v59 = vld [vmem:[#allocation3 + $0x11] ss:$2 sm:$0xff]  ;;  %2473 = vst.msk [vmem:[%s3253_s8] sm:$0xf] %vm2371_vm9, %v2469_v48 }
 0x25a   : > { %v2462_v4 = vadd.f32 %v2456_v59, %v2448_v12 }
 0x25c   : > { %v2466_v62 = vmul.f32 0.25, %v2462_v4 }
 0x25e   : > { %v2470_v42 = vpack.c.bf16 %v2466_v62, %v2466_v62 }
 0x260   : > { %2474 = vst.msk [vmem:[%s3253_s8 + $0x4] sm:$0xf] %vm2371_vm9, %v2470_v42 }
 0x261   : > { %3062 = shalt.err (!%p3059_p9)
}
 0x262   : > { %s3140_s8 = smov 64  }
 0x263   : > { %2953 = dma.vmem_to_hbm [thread:$0]  (%p3217_p3), %s2507_s18, 256, %s2509_s19, %s2488_s26, %s3140_s8, %s3140_s8, %s3134_s12  }
 0x264 PF: > { %p2959_p10 = scmp.ge.s32.totalorder %s3129_s22, 2  ;;  %s2536_s25 = sand.u32 1, %s3101_s15  }
 0x265   : > { %s2537_s24 = scalar_lea.sflag [#allocation5], %s2536_s25 }
 0x266   : > { %p2956_p11 = pnand %p2959_p10, %p3226_p8 }
 0x268   : > { %p2957_p12 = pneg %p2956_p11 }
 0x26a   : > { %3096 = dma.done.wait (%p2957_p12), %s2537_s24, 256  }
 0x26b   : > { %3098 = vsyncadd (%p2957_p12), %s2537_s24, 4294967040  ;;  %s18_s22 = sadd.s32 1, %s3129_s22   ;;  %s4457_s28 = sld [smem:[#allocation7_spill]] }
 0x26c   : > { %p15_p13 = scmp.ge.s32.totalorder %s18_s22, 6   ;;  %s4458_s12 = sld [smem:[#allocation8_spill]] }
 0x26d   : > { %s4459_s15 = smov %s3105_s16  ;;  %s4460_s16 = smov %s3109_s17 }
 0x26e   : > { %s4461_s17 = smov %s3235_s7  ;;  %s4462_s18 = smov %s3121_s20 }
 0x26f   : > { %s4463_s19 = smov %s3125_s21  ;;  %17 = sbr.rel (!%p15_p13) target bundleno = 5 (0x5), region = 104 }
 0x271   : > { %s4464_s20 = smov %s4457_s28 }
 0x272   : > { %s4465_s21 = smov %s4458_s12 }
 0x274   :  { %2543 = vsyncpa [#allocation5], 1 }
 0x275   :  { %2545 = vsyncpa [#allocation5 + $0x1], 1 }

</bundles_post_ra>
